<compile_context>
chip_gen: v7x
topology: tpu7x:2x2x1
jax: 0.10.0
libtpu: 0.0.40
codegen_flags: <defaults>
</compile_context>

<pallas_src>
import jax
import jax.numpy as jnp
from jax.experimental import pallas as pl
from jax.experimental.pallas import tpu as pltpu


def _encoder_vaev_kernel(x_ref, w_ih1_ref, w_hh1_ref, b1_ref,
                         w_ih2_ref, w_hh2_ref, b2_ref,
                         w_head_ref, b_head_ref,
                         out_ref, g1x_ref):
    f32 = jnp.float32
    bf16 = jnp.bfloat16

    TB = x_ref.shape[0]               # T * B rows, time-major
    B = b2_ref.shape[0]
    T = TB // B
    G1 = w_ih1_ref.shape[1] // 4      # lane-padded per-gate width, layer 1 (128)
    H2 = w_hh2_ref.shape[0]           # dense per-gate width, layer 2 (== embedding)

    # ---- Hoisted layer-1 input projection: a single matmul over all T*B rows ----
    # Off the serial dependency chain; hides under the first recurrence steps.
    g1x_ref[...] = (jnp.dot(x_ref[...], w_ih1_ref[...],
                            preferred_element_type=f32) + b1_ref[...])

    w_hh1 = w_hh1_ref[...]
    w_ih2 = w_ih2_ref[...]
    w_hh2 = w_hh2_ref[...]
    b2 = b2_ref[...]

    def lstm_gates(pre, G):
        # PyTorch gate order: i, f, g, o (layer 1: 128-lane slices; layer 2: 32-lane).
        i = jax.nn.sigmoid(pre[:, 0:G])
        f = jax.nn.sigmoid(pre[:, G:2 * G])
        g = jnp.tanh(pre[:, 2 * G:3 * G])
        o = jax.nn.sigmoid(pre[:, 3 * G:4 * G])
        return i, f, g, o

    h1 = jnp.zeros((B, G1), f32)      # padded lanes provably stay exactly 0
    c1 = jnp.zeros((B, G1), f32)
    h2 = jnp.zeros((B, H2), f32)      # dense layout (no padding)
    c2 = jnp.zeros((B, H2), f32)

    # ---- Fully unrolled recurrence (T static & small) ----
    for t in range(T):
        # Layer-2 recurrent partial: depends only on h2(t-1) -> off the critical
        # path, overlaps with layer-1 of this step.
        pre2_rec = jnp.dot(h2.astype(bf16), w_hh2,
                           preferred_element_type=f32) + b2

        # Layer 1 (LSTMenc): single recurrent matmul; input part from scratch.
        # t*B is a static multiple of B, so this is a static aligned slice.
        pre1 = (jnp.dot(h1.astype(bf16), w_hh1, preferred_element_type=f32)
                + g1x_ref[pl.ds(t * B, B)])
        i1, f1, g1, o1 = lstm_gates(pre1, G1)
        c1 = f1 * c1 + i1 * g1
        h1 = o1 * jnp.tanh(c1)

        # Layer 2 (LSTM1): only the h1-dependent half sits on the critical path.
        pre2 = jnp.dot(h1.astype(bf16), w_ih2,
                       preferred_element_type=f32) + pre2_rec
        i2, f2, g2, o2 = lstm_gates(pre2, H2)
        c2 = f2 * c2 + i2 * g2
        h2 = o2 * jnp.tanh(c2)

    # ---- Fused, lane-dense mu / log_var heads on the last layer-2 hidden state ----
    out_ref[...] = (jnp.dot(h2.astype(bf16), w_head_ref[...],
                            preferred_element_type=f32) + b_head_ref[...])


def _round_up(x, m):
    return ((x + m - 1) // m) * m


def encoder_vaev_forward(x, params):
    """x: (B, T, no_features) float32, batch_first like the PyTorch module."""
    B, T, F = x.shape
    H1 = params["w_hh1"].shape[1]     # hidden_size = 2 * embedding_size
    H2 = params["w_hh2"].shape[1]     # embedding_size
    L = params["w_mu"].shape[0]       # latent_dim
    G1 = _round_up(H1, 128)           # per-gate lane-padded width, layer 1
    HEAD = _round_up(2 * L, 128)      # lane-dense width of the fused head output
    f32, bf16 = jnp.float32, jnp.bfloat16

    # -------- layout plumbing (wrapper-side, one-time cost) --------
    # Time-major + flattened input so the layer-1 input projection is ONE matmul.
    x_flat = jnp.transpose(x, (1, 0, 2)).reshape(T * B, F).astype(bf16)   # (T*B, F)

    def pack_gates_w(w, H, n_in, n_in_pad, G):
        # (4*H, n_in) PyTorch layout -> (n_in_pad, 4*G) transposed; each gate's
        # column block zero-padded to G lanes; unused rows stay zero.
        out = jnp.zeros((n_in_pad, 4 * G), f32)
        for k in range(4):
            out = out.at[:n_in, k * G:k * G + H].set(
                w[k * H:(k + 1) * H, :].T.astype(f32))
        return out.astype(bf16)

    # Layer 1 (LSTMenc): per-gate columns padded to G1 lanes (vreg-aligned slices).
    w_ih1_p = pack_gates_w(params["w_ih1"], H1, F, F, G1)                 # (F, 4*G1)
    w_hh1_p = pack_gates_w(params["w_hh1"], H1, H1, G1, G1)               # (G1, 4*G1)
    b1 = (params["b_ih1"] + params["b_hh1"]).astype(f32)
    b1_pad = jnp.zeros((4 * G1,), f32)
    for k in range(4):
        b1_pad = b1_pad.at[k * G1:k * G1 + H1].set(b1[k * H1:(k + 1) * H1])
    b1_p = jnp.broadcast_to(b1_pad[None, :], (T * B, 4 * G1))             # pre-broadcast

    # Layer 2 (LSTM1): gates packed DENSELY (4*H2 lanes total = one MXU tile here);
    # the dense layout is just the plain transposed PyTorch weight.
    w_ih2_p = (jnp.zeros((G1, 4 * H2), f32)
               .at[:H1, :].set(params["w_ih2"].T.astype(f32))).astype(bf16)  # (G1, 4*H2)
    w_hh2_p = params["w_hh2"].T.astype(bf16)                                 # (H2, 4*H2)
    b2_p = jnp.broadcast_to(
        (params["b_ih2"] + params["b_hh2"]).astype(f32)[None, :], (B, 4 * H2))

    # Fused mu / log_var heads, padded to a lane-dense (128-wide) output slab.
    w_head = jnp.zeros((H2, HEAD), f32)
    w_head = w_head.at[:, :L].set(params["w_mu"].T.astype(f32))
    w_head = w_head.at[:, L:2 * L].set(params["w_lv"].T.astype(f32))
    w_head_p = w_head.astype(bf16)
    b_head = jnp.zeros((HEAD,), f32)
    b_head = b_head.at[:2 * L].set(
        jnp.concatenate([params["b_mu"], params["b_lv"]]).astype(f32))
    b_head_p = jnp.broadcast_to(b_head[None, :], (B, HEAD))

    out = pl.pallas_call(
        _encoder_vaev_kernel,
        out_shape=jax.ShapeDtypeStruct((B, HEAD), f32),
        # Gridless: whole-problem VMEM residency (total footprint << 1 MiB here).
        # TODO(synk): for long sequences, time-chunk with a grid + carried VMEM state
        #             and set vmem_limit_bytes; on v7x shard batch across the 2 TCs.
        in_specs=[pl.BlockSpec(memory_space=pltpu.VMEM)] * 9,
        out_specs=pl.BlockSpec(memory_space=pltpu.VMEM),
        scratch_shapes=[pltpu.VMEM((T * B, 4 * G1), f32)],
    )(x_flat, w_ih1_p, w_hh1_p, b1_p, w_ih2_p, w_hh2_p, b2_p, w_head_p, b_head_p)

    return out[:, :L], out[:, L:2 * L]


def init_params(key, no_features, embedding_size, latent_dim):
    """Deterministic synthetic init matching PyTorch parameter shapes."""
    H1 = 2 * embedding_size
    H2 = embedding_size
    ks = jax.random.split(key, 12)

    def u(k, shape, bound):
        return jax.random.uniform(k, shape, jnp.float32, -bound, bound)

    k1 = 1.0 / jnp.sqrt(H1)
    k2 = 1.0 / jnp.sqrt(H2)
    return {
        # LSTMenc: input no_features -> hidden H1
        "w_ih1": u(ks[0], (4 * H1, no_features), k1),
        "w_hh1": u(ks[1], (4 * H1, H1), k1),
        "b_ih1": u(ks[2], (4 * H1,), k1),
        "b_hh1": u(ks[3], (4 * H1,), k1),
        # LSTM1: input H1 -> hidden H2
        "w_ih2": u(ks[4], (4 * H2, H1), k2),
        "w_hh2": u(ks[5], (4 * H2, H2), k2),
        "b_ih2": u(ks[6], (4 * H2,), k2),
        "b_hh2": u(ks[7], (4 * H2,), k2),
        # mu / log_var heads: embedding_size -> latent_dim
        "w_mu": u(ks[8], (latent_dim, H2), k2),
        "b_mu": u(ks[9], (latent_dim,), k2),
        "w_lv": u(ks[10], (latent_dim, H2), k2),
        "b_lv": u(ks[11], (latent_dim,), k2),
    }


def _reference_forward(x, params):
    """Pure-JAX f32 reference (same math, no Pallas) for a sanity check."""
    B, T, _ = x.shape
    H1 = params["w_hh1"].shape[1]
    H2 = params["w_hh2"].shape[1]

    def cell(x_t, h, c, w_ih, w_hh, b_ih, b_hh, H):
        g = x_t @ w_ih.T + b_ih + h @ w_hh.T + b_hh
        i = jax.nn.sigmoid(g[:, :H])
        f = jax.nn.sigmoid(g[:, H:2 * H])
        gg = jnp.tanh(g[:, 2 * H:3 * H])
        o = jax.nn.sigmoid(g[:, 3 * H:])
        c = f * c + i * gg
        return o * jnp.tanh(c), c

    h1 = jnp.zeros((B, H1)); c1 = jnp.zeros((B, H1))
    h2 = jnp.zeros((B, H2)); c2 = jnp.zeros((B, H2))
    for t in range(T):
        h1, c1 = cell(x[:, t, :], h1, c1, params["w_ih1"], params["w_hh1"],
                      params["b_ih1"], params["b_hh1"], H1)
        h2, c2 = cell(h1, h2, c2, params["w_ih2"], params["w_hh2"],
                      params["b_ih2"], params["b_hh2"], H2)
    mu = h2 @ params["w_mu"].T + params["b_mu"]
    lv = h2 @ params["w_lv"].T + params["b_lv"]
    return mu, lv


if __name__ == "__main__":
    # Small shapes: batch=2, seq=8, no_features=4, embedding=32 (hidden=64), latent=16
    B, T, F = 2, 8, 4
    embedding_size, latent_dim = 32, 16

    key = jax.random.PRNGKey(0)
    kx, kp = jax.random.split(key)
    x = jax.random.normal(kx, (B, T, F), dtype=jnp.float32)
    params = init_params(kp, F, embedding_size, latent_dim)

    mu, log_var = jax.block_until_ready(encoder_vaev_forward(x, params))

    # Matmul operands are bf16 (f32 accumulation) per the perf review, so compare
    # against the f32 reference at a bf16-appropriate tolerance.
    mu_ref, lv_ref = _reference_forward(x, params)
    assert jnp.allclose(mu, mu_ref, atol=2e-2, rtol=2e-2)
    assert jnp.allclose(log_var, lv_ref, atol=2e-2, rtol=2e-2)
    assert mu.shape == (B, latent_dim) and log_var.shape == (B, latent_dim)

    print("KERNEL_OK")
</pallas_src>

<mosaic_0001>
module attributes {stable_mosaic.version = 11 : i64} {
  func.func @_encoder_vaev_kernel(%arg0: memref<16x4xbf16, #tpu.memory_space<vmem>>, %arg1: memref<4x512xbf16, #tpu.memory_space<vmem>>, %arg2: memref<128x512xbf16, #tpu.memory_space<vmem>>, %arg3: memref<16x512xf32, #tpu.memory_space<vmem>>, %arg4: memref<128x128xbf16, #tpu.memory_space<vmem>>, %arg5: memref<32x128xbf16, #tpu.memory_space<vmem>>, %arg6: memref<2x128xf32, #tpu.memory_space<vmem>>, %arg7: memref<32x128xbf16, #tpu.memory_space<vmem>>, %arg8: memref<2x128xf32, #tpu.memory_space<vmem>>, %arg9: memref<2x128xf32, #tpu.memory_space<vmem>>, %arg10: memref<16x512xf32, #tpu.memory_space<vmem>>) attributes {dimension_semantics = [], scalar_prefetch = 0 : i64, scratch_operands = 1 : i64, tpu.core_type = #tpu.core_type<tc>} {
    %c0 = arith.constant 0 : index
    %c0_0 = arith.constant 0 : index
    %0 = vector.load %arg0[%c0, %c0_0] : memref<16x4xbf16, #tpu.memory_space<vmem>>, vector<16x4xbf16>
    %c0_1 = arith.constant 0 : index
    %c0_2 = arith.constant 0 : index
    %1 = vector.load %arg1[%c0_1, %c0_2] : memref<4x512xbf16, #tpu.memory_space<vmem>>, vector<4x512xbf16>
    %cst = arith.constant dense<0.000000e+00> : vector<16x512xf32>
    %2 = tpu.matmul %0, %1, %cst {dimension_numbers = #tpu.dot_dimension_numbers<[1], [0], [0], [1], [0, 0, 1, 1], [], []>} : vector<16x4xbf16>, vector<4x512xbf16>, vector<16x512xf32> -> vector<16x512xf32>
    %c0_3 = arith.constant 0 : index
    %c0_4 = arith.constant 0 : index
    %3 = vector.load %arg3[%c0_3, %c0_4] : memref<16x512xf32, #tpu.memory_space<vmem>>, vector<16x512xf32>
    %4 = arith.addf %2, %3 : vector<16x512xf32>
    %c0_5 = arith.constant 0 : index
    %c0_6 = arith.constant 0 : index
    %5 = vector.load %arg10[%c0_5, %c0_6] : memref<16x512xf32, #tpu.memory_space<vmem>>, vector<16x512xf32>
    tpu.vector_store %arg10[%c0_5, %c0_6], %4 {strides = array<i32>} : memref<16x512xf32, #tpu.memory_space<vmem>>, vector<16x512xf32>,
    %c0_7 = arith.constant 0 : index
    %c0_8 = arith.constant 0 : index
    %6 = vector.load %arg2[%c0_7, %c0_8] : memref<128x512xbf16, #tpu.memory_space<vmem>>, vector<128x512xbf16>
    %c0_9 = arith.constant 0 : index
    %c0_10 = arith.constant 0 : index
    %7 = vector.load %arg4[%c0_9, %c0_10] : memref<128x128xbf16, #tpu.memory_space<vmem>>, vector<128x128xbf16>
    %c0_11 = arith.constant 0 : index
    %c0_12 = arith.constant 0 : index
    %8 = vector.load %arg5[%c0_11, %c0_12] : memref<32x128xbf16, #tpu.memory_space<vmem>>, vector<32x128xbf16>
    %c0_13 = arith.constant 0 : index
    %c0_14 = arith.constant 0 : index
    %9 = vector.load %arg6[%c0_13, %c0_14] : memref<2x128xf32, #tpu.memory_space<vmem>>, vector<2x128xf32>
    %cst_15 = arith.constant 0.000000e+00 : f32
    %10 = vector.broadcast %cst_15 : f32 to vector<2x128xf32>
    %cst_16 = arith.constant 0.000000e+00 : f32
    %11 = vector.broadcast %cst_16 : f32 to vector<2x128xf32>
    %cst_17 = arith.constant 0.000000e+00 : f32
    %12 = vector.broadcast %cst_17 : f32 to vector<2x32xf32>
    %cst_18 = arith.constant 0.000000e+00 : f32
    %13 = vector.broadcast %cst_18 : f32 to vector<2x32xf32>
    %14 = arith.truncf %12 : vector<2x32xf32> to vector<2x32xbf16>
    %cst_19 = arith.constant dense<0.000000e+00> : vector<2x128xf32>
    %15 = tpu.matmul %14, %8, %cst_19 {dimension_numbers = #tpu.dot_dimension_numbers<[1], [0], [0], [1], [0, 0, 1, 1], [], []>} : vector<2x32xbf16>, vector<32x128xbf16>, vector<2x128xf32> -> vector<2x128xf32>
    %16 = arith.addf %15, %9 : vector<2x128xf32>
    %17 = arith.truncf %10 : vector<2x128xf32> to vector<2x128xbf16>
    %cst_20 = arith.constant dense<0.000000e+00> : vector<2x512xf32>
    %18 = tpu.matmul %17, %6, %cst_20 {dimension_numbers = #tpu.dot_dimension_numbers<[1], [0], [0], [1], [0, 0, 1, 1], [], []>} : vector<2x128xbf16>, vector<128x512xbf16>, vector<2x512xf32> -> vector<2x512xf32>
    %c0_21 = arith.constant 0 : index
    %c0_22 = arith.constant 0 : index
    %19 = vector.load %arg10[%c0_21, %c0_22] : memref<16x512xf32, #tpu.memory_space<vmem>>, vector<2x512xf32>
    %20 = arith.addf %18, %19 : vector<2x512xf32>
    %21 = vector.extract_strided_slice %20 {offsets = [0, 0], sizes = [2, 128], strides = [1, 1]} : vector<2x512xf32> to vector<2x128xf32>
    %22 = arith.negf %21 : vector<2x128xf32>
    %23 = math.exp %22 : vector<2x128xf32>
    %cst_23 = arith.constant 1.000000e+00 : f32
    %24 = vector.broadcast %cst_23 : f32 to vector<2x128xf32>
    %25 = arith.addf %24, %23 : vector<2x128xf32>
    %26 = arith.divf %24, %25 : vector<2x128xf32>
    %27 = vector.extract_strided_slice %20 {offsets = [0, 128], sizes = [2, 128], strides = [1, 1]} : vector<2x512xf32> to vector<2x128xf32>
    %28 = arith.negf %27 : vector<2x128xf32>
    %29 = math.exp %28 : vector<2x128xf32>
    %cst_24 = arith.constant 1.000000e+00 : f32
    %30 = vector.broadcast %cst_24 : f32 to vector<2x128xf32>
    %31 = arith.addf %30, %29 : vector<2x128xf32>
    %32 = arith.divf %30, %31 : vector<2x128xf32>
    %33 = vector.extract_strided_slice %20 {offsets = [0, 256], sizes = [2, 128], strides = [1, 1]} : vector<2x512xf32> to vector<2x128xf32>
    %34 = math.tanh %33 : vector<2x128xf32>
    %35 = vector.extract_strided_slice %20 {offsets = [0, 384], sizes = [2, 128], strides = [1, 1]} : vector<2x512xf32> to vector<2x128xf32>
    %36 = arith.negf %35 : vector<2x128xf32>
    %37 = math.exp %36 : vector<2x128xf32>
    %cst_25 = arith.constant 1.000000e+00 : f32
    %38 = vector.broadcast %cst_25 : f32 to vector<2x128xf32>
    %39 = arith.addf %38, %37 : vector<2x128xf32>
    %40 = arith.divf %38, %39 : vector<2x128xf32>
    %41 = arith.mulf %32, %11 : vector<2x128xf32>
    %42 = arith.mulf %26, %34 : vector<2x128xf32>
    %43 = arith.addf %41, %42 : vector<2x128xf32>
    %44 = math.tanh %43 : vector<2x128xf32>
    %45 = arith.mulf %40, %44 : vector<2x128xf32>
    %46 = arith.truncf %45 : vector<2x128xf32> to vector<2x128xbf16>
    %cst_26 = arith.constant dense<0.000000e+00> : vector<2x128xf32>
    %47 = tpu.matmul %46, %7, %cst_26 {dimension_numbers = #tpu.dot_dimension_numbers<[1], [0], [0], [1], [0, 0, 1, 1], [], []>} : vector<2x128xbf16>, vector<128x128xbf16>, vector<2x128xf32> -> vector<2x128xf32>
    %48 = arith.addf %47, %16 : vector<2x128xf32>
    %49 = vector.extract_strided_slice %48 {offsets = [0, 0], sizes = [2, 32], strides = [1, 1]} : vector<2x128xf32> to vector<2x32xf32>
    %50 = arith.negf %49 : vector<2x32xf32>
    %51 = math.exp %50 : vector<2x32xf32>
    %cst_27 = arith.constant 1.000000e+00 : f32
    %52 = vector.broadcast %cst_27 : f32 to vector<2x32xf32>
    %53 = arith.addf %52, %51 : vector<2x32xf32>
    %54 = arith.divf %52, %53 : vector<2x32xf32>
    %55 = vector.extract_strided_slice %48 {offsets = [0, 32], sizes = [2, 32], strides = [1, 1]} : vector<2x128xf32> to vector<2x32xf32>
    %56 = arith.negf %55 : vector<2x32xf32>
    %57 = math.exp %56 : vector<2x32xf32>
    %cst_28 = arith.constant 1.000000e+00 : f32
    %58 = vector.broadcast %cst_28 : f32 to vector<2x32xf32>
    %59 = arith.addf %58, %57 : vector<2x32xf32>
    %60 = arith.divf %58, %59 : vector<2x32xf32>
    %61 = vector.extract_strided_slice %48 {offsets = [0, 64], sizes = [2, 32], strides = [1, 1]} : vector<2x128xf32> to vector<2x32xf32>
    %62 = math.tanh %61 : vector<2x32xf32>
    %63 = vector.extract_strided_slice %48 {offsets = [0, 96], sizes = [2, 32], strides = [1, 1]} : vector<2x128xf32> to vector<2x32xf32>
    %64 = arith.negf %63 : vector<2x32xf32>
    %65 = math.exp %64 : vector<2x32xf32>
    %cst_29 = arith.constant 1.000000e+00 : f32
    %66 = vector.broadcast %cst_29 : f32 to vector<2x32xf32>
    %67 = arith.addf %66, %65 : vector<2x32xf32>
    %68 = arith.divf %66, %67 : vector<2x32xf32>
    %69 = arith.mulf %60, %13 : vector<2x32xf32>
    %70 = arith.mulf %54, %62 : vector<2x32xf32>
    %71 = arith.addf %69, %70 : vector<2x32xf32>
    %72 = math.tanh %71 : vector<2x32xf32>
    %73 = arith.mulf %68, %72 : vector<2x32xf32>
    %74 = arith.truncf %73 : vector<2x32xf32> to vector<2x32xbf16>
    %cst_30 = arith.constant dense<0.000000e+00> : vector<2x128xf32>
    %75 = tpu.matmul %74, %8, %cst_30 {dimension_numbers = #tpu.dot_dimension_numbers<[1], [0], [0], [1], [0, 0, 1, 1], [], []>} : vector<2x32xbf16>, vector<32x128xbf16>, vector<2x128xf32> -> vector<2x128xf32>
    %76 = arith.addf %75, %9 : vector<2x128xf32>
    %77 = arith.truncf %45 : vector<2x128xf32> to vector<2x128xbf16>
    %cst_31 = arith.constant dense<0.000000e+00> : vector<2x512xf32>
    %78 = tpu.matmul %77, %6, %cst_31 {dimension_numbers = #tpu.dot_dimension_numbers<[1], [0], [0], [1], [0, 0, 1, 1], [], []>} : vector<2x128xbf16>, vector<128x512xbf16>, vector<2x512xf32> -> vector<2x512xf32>
    %c2 = arith.constant 2 : index
    %c0_32 = arith.constant 0 : index
    %79 = vector.load %arg10[%c2, %c0_32] : memref<16x512xf32, #tpu.memory_space<vmem>>, vector<2x512xf32>
    %80 = arith.addf %78, %79 : vector<2x512xf32>
    %81 = vector.extract_strided_slice %80 {offsets = [0, 0], sizes = [2, 128], strides = [1, 1]} : vector<2x512xf32> to vector<2x128xf32>
    %82 = arith.negf %81 : vector<2x128xf32>
    %83 = math.exp %82 : vector<2x128xf32>
    %cst_33 = arith.constant 1.000000e+00 : f32
    %84 = vector.broadcast %cst_33 : f32 to vector<2x128xf32>
    %85 = arith.addf %84, %83 : vector<2x128xf32>
    %86 = arith.divf %84, %85 : vector<2x128xf32>
    %87 = vector.extract_strided_slice %80 {offsets = [0, 128], sizes = [2, 128], strides = [1, 1]} : vector<2x512xf32> to vector<2x128xf32>
    %88 = arith.negf %87 : vector<2x128xf32>
    %89 = math.exp %88 : vector<2x128xf32>
    %cst_34 = arith.constant 1.000000e+00 : f32
    %90 = vector.broadcast %cst_34 : f32 to vector<2x128xf32>
    %91 = arith.addf %90, %89 : vector<2x128xf32>
    %92 = arith.divf %90, %91 : vector<2x128xf32>
    %93 = vector.extract_strided_slice %80 {offsets = [0, 256], sizes = [2, 128], strides = [1, 1]} : vector<2x512xf32> to vector<2x128xf32>
    %94 = math.tanh %93 : vector<2x128xf32>
    %95 = vector.extract_strided_slice %80 {offsets = [0, 384], sizes = [2, 128], strides = [1, 1]} : vector<2x512xf32> to vector<2x128xf32>
    %96 = arith.negf %95 : vector<2x128xf32>
    %97 = math.exp %96 : vector<2x128xf32>
    %cst_35 = arith.constant 1.000000e+00 : f32
    %98 = vector.broadcast %cst_35 : f32 to vector<2x128xf32>
    %99 = arith.addf %98, %97 : vector<2x128xf32>
    %100 = arith.divf %98, %99 : vector<2x128xf32>
    %101 = arith.mulf %92, %43 : vector<2x128xf32>
    %102 = arith.mulf %86, %94 : vector<2x128xf32>
    %103 = arith.addf %101, %102 : vector<2x128xf32>
    %104 = math.tanh %103 : vector<2x128xf32>
    %105 = arith.mulf %100, %104 : vector<2x128xf32>
    %106 = arith.truncf %105 : vector<2x128xf32> to vector<2x128xbf16>
    %cst_36 = arith.constant dense<0.000000e+00> : vector<2x128xf32>
    %107 = tpu.matmul %106, %7, %cst_36 {dimension_numbers = #tpu.dot_dimension_numbers<[1], [0], [0], [1], [0, 0, 1, 1], [], []>} : vector<2x128xbf16>, vector<128x128xbf16>, vector<2x128xf32> -> vector<2x128xf32>
    %108 = arith.addf %107, %76 : vector<2x128xf32>
    %109 = vector.extract_strided_slice %108 {offsets = [0, 0], sizes = [2, 32], strides = [1, 1]} : vector<2x128xf32> to vector<2x32xf32>
    %110 = arith.negf %109 : vector<2x32xf32>
    %111 = math.exp %110 : vector<2x32xf32>
    %cst_37 = arith.constant 1.000000e+00 : f32
    %112 = vector.broadcast %cst_37 : f32 to vector<2x32xf32>
    %113 = arith.addf %112, %111 : vector<2x32xf32>
    %114 = arith.divf %112, %113 : vector<2x32xf32>
    %115 = vector.extract_strided_slice %108 {offsets = [0, 32], sizes = [2, 32], strides = [1, 1]} : vector<2x128xf32> to vector<2x32xf32>
    %116 = arith.negf %115 : vector<2x32xf32>
    %117 = math.exp %116 : vector<2x32xf32>
    %cst_38 = arith.constant 1.000000e+00 : f32
    %118 = vector.broadcast %cst_38 : f32 to vector<2x32xf32>
    %119 = arith.addf %118, %117 : vector<2x32xf32>
    %120 = arith.divf %118, %119 : vector<2x32xf32>
    %121 = vector.extract_strided_slice %108 {offsets = [0, 64], sizes = [2, 32], strides = [1, 1]} : vector<2x128xf32> to vector<2x32xf32>
    %122 = math.tanh %121 : vector<2x32xf32>
    %123 = vector.extract_strided_slice %108 {offsets = [0, 96], sizes = [2, 32], strides = [1, 1]} : vector<2x128xf32> to vector<2x32xf32>
    %124 = arith.negf %123 : vector<2x32xf32>
    %125 = math.exp %124 : vector<2x32xf32>
    %cst_39 = arith.constant 1.000000e+00 : f32
    %126 = vector.broadcast %cst_39 : f32 to vector<2x32xf32>
    %127 = arith.addf %126, %125 : vector<2x32xf32>
    %128 = arith.divf %126, %127 : vector<2x32xf32>
    %129 = arith.mulf %120, %71 : vector<2x32xf32>
    %130 = arith.mulf %114, %122 : vector<2x32xf32>
    %131 = arith.addf %129, %130 : vector<2x32xf32>
    %132 = math.tanh %131 : vector<2x32xf32>
    %133 = arith.mulf %128, %132 : vector<2x32xf32>
    %134 = arith.truncf %133 : vector<2x32xf32> to vector<2x32xbf16>
    %cst_40 = arith.constant dense<0.000000e+00> : vector<2x128xf32>
    %135 = tpu.matmul %134, %8, %cst_40 {dimension_numbers = #tpu.dot_dimension_numbers<[1], [0], [0], [1], [0, 0, 1, 1], [], []>} : vector<2x32xbf16>, vector<32x128xbf16>, vector<2x128xf32> -> vector<2x128xf32>
    %136 = arith.addf %135, %9 : vector<2x128xf32>
    %137 = arith.truncf %105 : vector<2x128xf32> to vector<2x128xbf16>
    %cst_41 = arith.constant dense<0.000000e+00> : vector<2x512xf32>
    %138 = tpu.matmul %137, %6, %cst_41 {dimension_numbers = #tpu.dot_dimension_numbers<[1], [0], [0], [1], [0, 0, 1, 1], [], []>} : vector<2x128xbf16>, vector<128x512xbf16>, vector<2x512xf32> -> vector<2x512xf32>
    %c4 = arith.constant 4 : index
    %c0_42 = arith.constant 0 : index
    %139 = vector.load %arg10[%c4, %c0_42] : memref<16x512xf32, #tpu.memory_space<vmem>>, vector<2x512xf32>
    %140 = arith.addf %138, %139 : vector<2x512xf32>
    %141 = vector.extract_strided_slice %140 {offsets = [0, 0], sizes = [2, 128], strides = [1, 1]} : vector<2x512xf32> to vector<2x128xf32>
    %142 = arith.negf %141 : vector<2x128xf32>
    %143 = math.exp %142 : vector<2x128xf32>
    %cst_43 = arith.constant 1.000000e+00 : f32
    %144 = vector.broadcast %cst_43 : f32 to vector<2x128xf32>
    %145 = arith.addf %144, %143 : vector<2x128xf32>
    %146 = arith.divf %144, %145 : vector<2x128xf32>
    %147 = vector.extract_strided_slice %140 {offsets = [0, 128], sizes = [2, 128], strides = [1, 1]} : vector<2x512xf32> to vector<2x128xf32>
    %148 = arith.negf %147 : vector<2x128xf32>
    %149 = math.exp %148 : vector<2x128xf32>
    %cst_44 = arith.constant 1.000000e+00 : f32
    %150 = vector.broadcast %cst_44 : f32 to vector<2x128xf32>
    %151 = arith.addf %150, %149 : vector<2x128xf32>
    %152 = arith.divf %150, %151 : vector<2x128xf32>
    %153 = vector.extract_strided_slice %140 {offsets = [0, 256], sizes = [2, 128], strides = [1, 1]} : vector<2x512xf32> to vector<2x128xf32>
    %154 = math.tanh %153 : vector<2x128xf32>
    %155 = vector.extract_strided_slice %140 {offsets = [0, 384], sizes = [2, 128], strides = [1, 1]} : vector<2x512xf32> to vector<2x128xf32>
    %156 = arith.negf %155 : vector<2x128xf32>
    %157 = math.exp %156 : vector<2x128xf32>
    %cst_45 = arith.constant 1.000000e+00 : f32
    %158 = vector.broadcast %cst_45 : f32 to vector<2x128xf32>
    %159 = arith.addf %158, %157 : vector<2x128xf32>
    %160 = arith.divf %158, %159 : vector<2x128xf32>
    %161 = arith.mulf %152, %103 : vector<2x128xf32>
    %162 = arith.mulf %146, %154 : vector<2x128xf32>
    %163 = arith.addf %161, %162 : vector<2x128xf32>
    %164 = math.tanh %163 : vector<2x128xf32>
    %165 = arith.mulf %160, %164 : vector<2x128xf32>
    %166 = arith.truncf %165 : vector<2x128xf32> to vector<2x128xbf16>
    %cst_46 = arith.constant dense<0.000000e+00> : vector<2x128xf32>
    %167 = tpu.matmul %166, %7, %cst_46 {dimension_numbers = #tpu.dot_dimension_numbers<[1], [0], [0], [1], [0, 0, 1, 1], [], []>} : vector<2x128xbf16>, vector<128x128xbf16>, vector<2x128xf32> -> vector<2x128xf32>
    %168 = arith.addf %167, %136 : vector<2x128xf32>
    %169 = vector.extract_strided_slice %168 {offsets = [0, 0], sizes = [2, 32], strides = [1, 1]} : vector<2x128xf32> to vector<2x32xf32>
    %170 = arith.negf %169 : vector<2x32xf32>
    %171 = math.exp %170 : vector<2x32xf32>
    %cst_47 = arith.constant 1.000000e+00 : f32
    %172 = vector.broadcast %cst_47 : f32 to vector<2x32xf32>
    %173 = arith.addf %172, %171 : vector<2x32xf32>
    %174 = arith.divf %172, %173 : vector<2x32xf32>
    %175 = vector.extract_strided_slice %168 {offsets = [0, 32], sizes = [2, 32], strides = [1, 1]} : vector<2x128xf32> to vector<2x32xf32>
    %176 = arith.negf %175 : vector<2x32xf32>
    %177 = math.exp %176 : vector<2x32xf32>
    %cst_48 = arith.constant 1.000000e+00 : f32
    %178 = vector.broadcast %cst_48 : f32 to vector<2x32xf32>
    %179 = arith.addf %178, %177 : vector<2x32xf32>
    %180 = arith.divf %178, %179 : vector<2x32xf32>
    %181 = vector.extract_strided_slice %168 {offsets = [0, 64], sizes = [2, 32], strides = [1, 1]} : vector<2x128xf32> to vector<2x32xf32>
    %182 = math.tanh %181 : vector<2x32xf32>
    %183 = vector.extract_strided_slice %168 {offsets = [0, 96], sizes = [2, 32], strides = [1, 1]} : vector<2x128xf32> to vector<2x32xf32>
    %184 = arith.negf %183 : vector<2x32xf32>
    %185 = math.exp %184 : vector<2x32xf32>
    %cst_49 = arith.constant 1.000000e+00 : f32
    %186 = vector.broadcast %cst_49 : f32 to vector<2x32xf32>
    %187 = arith.addf %186, %185 : vector<2x32xf32>
    %188 = arith.divf %186, %187 : vector<2x32xf32>
    %189 = arith.mulf %180, %131 : vector<2x32xf32>
    %190 = arith.mulf %174, %182 : vector<2x32xf32>
    %191 = arith.addf %189, %190 : vector<2x32xf32>
    %192 = math.tanh %191 : vector<2x32xf32>
    %193 = arith.mulf %188, %192 : vector<2x32xf32>
    %194 = arith.truncf %193 : vector<2x32xf32> to vector<2x32xbf16>
    %cst_50 = arith.constant dense<0.000000e+00> : vector<2x128xf32>
    %195 = tpu.matmul %194, %8, %cst_50 {dimension_numbers = #tpu.dot_dimension_numbers<[1], [0], [0], [1], [0, 0, 1, 1], [], []>} : vector<2x32xbf16>, vector<32x128xbf16>, vector<2x128xf32> -> vector<2x128xf32>
    %196 = arith.addf %195, %9 : vector<2x128xf32>
    %197 = arith.truncf %165 : vector<2x128xf32> to vector<2x128xbf16>
    %cst_51 = arith.constant dense<0.000000e+00> : vector<2x512xf32>
    %198 = tpu.matmul %197, %6, %cst_51 {dimension_numbers = #tpu.dot_dimension_numbers<[1], [0], [0], [1], [0, 0, 1, 1], [], []>} : vector<2x128xbf16>, vector<128x512xbf16>, vector<2x512xf32> -> vector<2x512xf32>
    %c6 = arith.constant 6 : index
    %c0_52 = arith.constant 0 : index
    %199 = vector.load %arg10[%c6, %c0_52] : memref<16x512xf32, #tpu.memory_space<vmem>>, vector<2x512xf32>
    %200 = arith.addf %198, %199 : vector<2x512xf32>
    %201 = vector.extract_strided_slice %200 {offsets = [0, 0], sizes = [2, 128], strides = [1, 1]} : vector<2x512xf32> to vector<2x128xf32>
    %202 = arith.negf %201 : vector<2x128xf32>
    %203 = math.exp %202 : vector<2x128xf32>
    %cst_53 = arith.constant 1.000000e+00 : f32
    %204 = vector.broadcast %cst_53 : f32 to vector<2x128xf32>
    %205 = arith.addf %204, %203 : vector<2x128xf32>
    %206 = arith.divf %204, %205 : vector<2x128xf32>
    %207 = vector.extract_strided_slice %200 {offsets = [0, 128], sizes = [2, 128], strides = [1, 1]} : vector<2x512xf32> to vector<2x128xf32>
    %208 = arith.negf %207 : vector<2x128xf32>
    %209 = math.exp %208 : vector<2x128xf32>
    %cst_54 = arith.constant 1.000000e+00 : f32
    %210 = vector.broadcast %cst_54 : f32 to vector<2x128xf32>
    %211 = arith.addf %210, %209 : vector<2x128xf32>
    %212 = arith.divf %210, %211 : vector<2x128xf32>
    %213 = vector.extract_strided_slice %200 {offsets = [0, 256], sizes = [2, 128], strides = [1, 1]} : vector<2x512xf32> to vector<2x128xf32>
    %214 = math.tanh %213 : vector<2x128xf32>
    %215 = vector.extract_strided_slice %200 {offsets = [0, 384], sizes = [2, 128], strides = [1, 1]} : vector<2x512xf32> to vector<2x128xf32>
    %216 = arith.negf %215 : vector<2x128xf32>
    %217 = math.exp %216 : vector<2x128xf32>
    %cst_55 = arith.constant 1.000000e+00 : f32
    %218 = vector.broadcast %cst_55 : f32 to vector<2x128xf32>
    %219 = arith.addf %218, %217 : vector<2x128xf32>
    %220 = arith.divf %218, %219 : vector<2x128xf32>
    %221 = arith.mulf %212, %163 : vector<2x128xf32>
    %222 = arith.mulf %206, %214 : vector<2x128xf32>
    %223 = arith.addf %221, %222 : vector<2x128xf32>
    %224 = math.tanh %223 : vector<2x128xf32>
    %225 = arith.mulf %220, %224 : vector<2x128xf32>
    %226 = arith.truncf %225 : vector<2x128xf32> to vector<2x128xbf16>
    %cst_56 = arith.constant dense<0.000000e+00> : vector<2x128xf32>
    %227 = tpu.matmul %226, %7, %cst_56 {dimension_numbers = #tpu.dot_dimension_numbers<[1], [0], [0], [1], [0, 0, 1, 1], [], []>} : vector<2x128xbf16>, vector<128x128xbf16>, vector<2x128xf32> -> vector<2x128xf32>
    %228 = arith.addf %227, %196 : vector<2x128xf32>
    %229 = vector.extract_strided_slice %228 {offsets = [0, 0], sizes = [2, 32], strides = [1, 1]} : vector<2x128xf32> to vector<2x32xf32>
    %230 = arith.negf %229 : vector<2x32xf32>
    %231 = math.exp %230 : vector<2x32xf32>
    %cst_57 = arith.constant 1.000000e+00 : f32
    %232 = vector.broadcast %cst_57 : f32 to vector<2x32xf32>
    %233 = arith.addf %232, %231 : vector<2x32xf32>
    %234 = arith.divf %232, %233 : vector<2x32xf32>
    %235 = vector.extract_strided_slice %228 {offsets = [0, 32], sizes = [2, 32], strides = [1, 1]} : vector<2x128xf32> to vector<2x32xf32>
    %236 = arith.negf %235 : vector<2x32xf32>
    %237 = math.exp %236 : vector<2x32xf32>
    %cst_58 = arith.constant 1.000000e+00 : f32
    %238 = vector.broadcast %cst_58 : f32 to vector<2x32xf32>
    %239 = arith.addf %238, %237 : vector<2x32xf32>
    %240 = arith.divf %238, %239 : vector<2x32xf32>
    %241 = vector.extract_strided_slice %228 {offsets = [0, 64], sizes = [2, 32], strides = [1, 1]} : vector<2x128xf32> to vector<2x32xf32>
    %242 = math.tanh %241 : vector<2x32xf32>
    %243 = vector.extract_strided_slice %228 {offsets = [0, 96], sizes = [2, 32], strides = [1, 1]} : vector<2x128xf32> to vector<2x32xf32>
    %244 = arith.negf %243 : vector<2x32xf32>
    %245 = math.exp %244 : vector<2x32xf32>
    %cst_59 = arith.constant 1.000000e+00 : f32
    %246 = vector.broadcast %cst_59 : f32 to vector<2x32xf32>
    %247 = arith.addf %246, %245 : vector<2x32xf32>
    %248 = arith.divf %246, %247 : vector<2x32xf32>
    %249 = arith.mulf %240, %191 : vector<2x32xf32>
    %250 = arith.mulf %234, %242 : vector<2x32xf32>
    %251 = arith.addf %249, %250 : vector<2x32xf32>
    %252 = math.tanh %251 : vector<2x32xf32>
    %253 = arith.mulf %248, %252 : vector<2x32xf32>
    %254 = arith.truncf %253 : vector<2x32xf32> to vector<2x32xbf16>
    %cst_60 = arith.constant dense<0.000000e+00> : vector<2x128xf32>
    %255 = tpu.matmul %254, %8, %cst_60 {dimension_numbers = #tpu.dot_dimension_numbers<[1], [0], [0], [1], [0, 0, 1, 1], [], []>} : vector<2x32xbf16>, vector<32x128xbf16>, vector<2x128xf32> -> vector<2x128xf32>
    %256 = arith.addf %255, %9 : vector<2x128xf32>
    %257 = arith.truncf %225 : vector<2x128xf32> to vector<2x128xbf16>
    %cst_61 = arith.constant dense<0.000000e+00> : vector<2x512xf32>
    %258 = tpu.matmul %257, %6, %cst_61 {dimension_numbers = #tpu.dot_dimension_numbers<[1], [0], [0], [1], [0, 0, 1, 1], [], []>} : vector<2x128xbf16>, vector<128x512xbf16>, vector<2x512xf32> -> vector<2x512xf32>
    %c8 = arith.constant 8 : index
    %c0_62 = arith.constant 0 : index
    %259 = vector.load %arg10[%c8, %c0_62] : memref<16x512xf32, #tpu.memory_space<vmem>>, vector<2x512xf32>
    %260 = arith.addf %258, %259 : vector<2x512xf32>
    %261 = vector.extract_strided_slice %260 {offsets = [0, 0], sizes = [2, 128], strides = [1, 1]} : vector<2x512xf32> to vector<2x128xf32>
    %262 = arith.negf %261 : vector<2x128xf32>
    %263 = math.exp %262 : vector<2x128xf32>
    %cst_63 = arith.constant 1.000000e+00 : f32
    %264 = vector.broadcast %cst_63 : f32 to vector<2x128xf32>
    %265 = arith.addf %264, %263 : vector<2x128xf32>
    %266 = arith.divf %264, %265 : vector<2x128xf32>
    %267 = vector.extract_strided_slice %260 {offsets = [0, 128], sizes = [2, 128], strides = [1, 1]} : vector<2x512xf32> to vector<2x128xf32>
    %268 = arith.negf %267 : vector<2x128xf32>
    %269 = math.exp %268 : vector<2x128xf32>
    %cst_64 = arith.constant 1.000000e+00 : f32
    %270 = vector.broadcast %cst_64 : f32 to vector<2x128xf32>
    %271 = arith.addf %270, %269 : vector<2x128xf32>
    %272 = arith.divf %270, %271 : vector<2x128xf32>
    %273 = vector.extract_strided_slice %260 {offsets = [0, 256], sizes = [2, 128], strides = [1, 1]} : vector<2x512xf32> to vector<2x128xf32>
    %274 = math.tanh %273 : vector<2x128xf32>
    %275 = vector.extract_strided_slice %260 {offsets = [0, 384], sizes = [2, 128], strides = [1, 1]} : vector<2x512xf32> to vector<2x128xf32>
    %276 = arith.negf %275 : vector<2x128xf32>
    %277 = math.exp %276 : vector<2x128xf32>
    %cst_65 = arith.constant 1.000000e+00 : f32
    %278 = vector.broadcast %cst_65 : f32 to vector<2x128xf32>
    %279 = arith.addf %278, %277 : vector<2x128xf32>
    %280 = arith.divf %278, %279 : vector<2x128xf32>
    %281 = arith.mulf %272, %223 : vector<2x128xf32>
    %282 = arith.mulf %266, %274 : vector<2x128xf32>
    %283 = arith.addf %281, %282 : vector<2x128xf32>
    %284 = math.tanh %283 : vector<2x128xf32>
    %285 = arith.mulf %280, %284 : vector<2x128xf32>
    %286 = arith.truncf %285 : vector<2x128xf32> to vector<2x128xbf16>
    %cst_66 = arith.constant dense<0.000000e+00> : vector<2x128xf32>
    %287 = tpu.matmul %286, %7, %cst_66 {dimension_numbers = #tpu.dot_dimension_numbers<[1], [0], [0], [1], [0, 0, 1, 1], [], []>} : vector<2x128xbf16>, vector<128x128xbf16>, vector<2x128xf32> -> vector<2x128xf32>
    %288 = arith.addf %287, %256 : vector<2x128xf32>
    %289 = vector.extract_strided_slice %288 {offsets = [0, 0], sizes = [2, 32], strides = [1, 1]} : vector<2x128xf32> to vector<2x32xf32>
    %290 = arith.negf %289 : vector<2x32xf32>
    %291 = math.exp %290 : vector<2x32xf32>
    %cst_67 = arith.constant 1.000000e+00 : f32
    %292 = vector.broadcast %cst_67 : f32 to vector<2x32xf32>
    %293 = arith.addf %292, %291 : vector<2x32xf32>
    %294 = arith.divf %292, %293 : vector<2x32xf32>
    %295 = vector.extract_strided_slice %288 {offsets = [0, 32], sizes = [2, 32], strides = [1, 1]} : vector<2x128xf32> to vector<2x32xf32>
    %296 = arith.negf %295 : vector<2x32xf32>
    %297 = math.exp %296 : vector<2x32xf32>
    %cst_68 = arith.constant 1.000000e+00 : f32
    %298 = vector.broadcast %cst_68 : f32 to vector<2x32xf32>
    %299 = arith.addf %298, %297 : vector<2x32xf32>
    %300 = arith.divf %298, %299 : vector<2x32xf32>
    %301 = vector.extract_strided_slice %288 {offsets = [0, 64], sizes = [2, 32], strides = [1, 1]} : vector<2x128xf32> to vector<2x32xf32>
    %302 = math.tanh %301 : vector<2x32xf32>
    %303 = vector.extract_strided_slice %288 {offsets = [0, 96], sizes = [2, 32], strides = [1, 1]} : vector<2x128xf32> to vector<2x32xf32>
    %304 = arith.negf %303 : vector<2x32xf32>
    %305 = math.exp %304 : vector<2x32xf32>
    %cst_69 = arith.constant 1.000000e+00 : f32
    %306 = vector.broadcast %cst_69 : f32 to vector<2x32xf32>
    %307 = arith.addf %306, %305 : vector<2x32xf32>
    %308 = arith.divf %306, %307 : vector<2x32xf32>
    %309 = arith.mulf %300, %251 : vector<2x32xf32>
    %310 = arith.mulf %294, %302 : vector<2x32xf32>
    %311 = arith.addf %309, %310 : vector<2x32xf32>
    %312 = math.tanh %311 : vector<2x32xf32>
    %313 = arith.mulf %308, %312 : vector<2x32xf32>
    %314 = arith.truncf %313 : vector<2x32xf32> to vector<2x32xbf16>
    %cst_70 = arith.constant dense<0.000000e+00> : vector<2x128xf32>
    %315 = tpu.matmul %314, %8, %cst_70 {dimension_numbers = #tpu.dot_dimension_numbers<[1], [0], [0], [1], [0, 0, 1, 1], [], []>} : vector<2x32xbf16>, vector<32x128xbf16>, vector<2x128xf32> -> vector<2x128xf32>
    %316 = arith.addf %315, %9 : vector<2x128xf32>
    %317 = arith.truncf %285 : vector<2x128xf32> to vector<2x128xbf16>
    %cst_71 = arith.constant dense<0.000000e+00> : vector<2x512xf32>
    %318 = tpu.matmul %317, %6, %cst_71 {dimension_numbers = #tpu.dot_dimension_numbers<[1], [0], [0], [1], [0, 0, 1, 1], [], []>} : vector<2x128xbf16>, vector<128x512xbf16>, vector<2x512xf32> -> vector<2x512xf32>
    %c10 = arith.constant 10 : index
    %c0_72 = arith.constant 0 : index
    %319 = vector.load %arg10[%c10, %c0_72] : memref<16x512xf32, #tpu.memory_space<vmem>>, vector<2x512xf32>
    %320 = arith.addf %318, %319 : vector<2x512xf32>
    %321 = vector.extract_strided_slice %320 {offsets = [0, 0], sizes = [2, 128], strides = [1, 1]} : vector<2x512xf32> to vector<2x128xf32>
    %322 = arith.negf %321 : vector<2x128xf32>
    %323 = math.exp %322 : vector<2x128xf32>
    %cst_73 = arith.constant 1.000000e+00 : f32
    %324 = vector.broadcast %cst_73 : f32 to vector<2x128xf32>
    %325 = arith.addf %324, %323 : vector<2x128xf32>
    %326 = arith.divf %324, %325 : vector<2x128xf32>
    %327 = vector.extract_strided_slice %320 {offsets = [0, 128], sizes = [2, 128], strides = [1, 1]} : vector<2x512xf32> to vector<2x128xf32>
    %328 = arith.negf %327 : vector<2x128xf32>
    %329 = math.exp %328 : vector<2x128xf32>
    %cst_74 = arith.constant 1.000000e+00 : f32
    %330 = vector.broadcast %cst_74 : f32 to vector<2x128xf32>
    %331 = arith.addf %330, %329 : vector<2x128xf32>
    %332 = arith.divf %330, %331 : vector<2x128xf32>
    %333 = vector.extract_strided_slice %320 {offsets = [0, 256], sizes = [2, 128], strides = [1, 1]} : vector<2x512xf32> to vector<2x128xf32>
    %334 = math.tanh %333 : vector<2x128xf32>
    %335 = vector.extract_strided_slice %320 {offsets = [0, 384], sizes = [2, 128], strides = [1, 1]} : vector<2x512xf32> to vector<2x128xf32>
    %336 = arith.negf %335 : vector<2x128xf32>
    %337 = math.exp %336 : vector<2x128xf32>
    %cst_75 = arith.constant 1.000000e+00 : f32
    %338 = vector.broadcast %cst_75 : f32 to vector<2x128xf32>
    %339 = arith.addf %338, %337 : vector<2x128xf32>
    %340 = arith.divf %338, %339 : vector<2x128xf32>
    %341 = arith.mulf %332, %283 : vector<2x128xf32>
    %342 = arith.mulf %326, %334 : vector<2x128xf32>
    %343 = arith.addf %341, %342 : vector<2x128xf32>
    %344 = math.tanh %343 : vector<2x128xf32>
    %345 = arith.mulf %340, %344 : vector<2x128xf32>
    %346 = arith.truncf %345 : vector<2x128xf32> to vector<2x128xbf16>
    %cst_76 = arith.constant dense<0.000000e+00> : vector<2x128xf32>
    %347 = tpu.matmul %346, %7, %cst_76 {dimension_numbers = #tpu.dot_dimension_numbers<[1], [0], [0], [1], [0, 0, 1, 1], [], []>} : vector<2x128xbf16>, vector<128x128xbf16>, vector<2x128xf32> -> vector<2x128xf32>
    %348 = arith.addf %347, %316 : vector<2x128xf32>
    %349 = vector.extract_strided_slice %348 {offsets = [0, 0], sizes = [2, 32], strides = [1, 1]} : vector<2x128xf32> to vector<2x32xf32>
    %350 = arith.negf %349 : vector<2x32xf32>
    %351 = math.exp %350 : vector<2x32xf32>
    %cst_77 = arith.constant 1.000000e+00 : f32
    %352 = vector.broadcast %cst_77 : f32 to vector<2x32xf32>
    %353 = arith.addf %352, %351 : vector<2x32xf32>
    %354 = arith.divf %352, %353 : vector<2x32xf32>
    %355 = vector.extract_strided_slice %348 {offsets = [0, 32], sizes = [2, 32], strides = [1, 1]} : vector<2x128xf32> to vector<2x32xf32>
    %356 = arith.negf %355 : vector<2x32xf32>
    %357 = math.exp %356 : vector<2x32xf32>
    %cst_78 = arith.constant 1.000000e+00 : f32
    %358 = vector.broadcast %cst_78 : f32 to vector<2x32xf32>
    %359 = arith.addf %358, %357 : vector<2x32xf32>
    %360 = arith.divf %358, %359 : vector<2x32xf32>
    %361 = vector.extract_strided_slice %348 {offsets = [0, 64], sizes = [2, 32], strides = [1, 1]} : vector<2x128xf32> to vector<2x32xf32>
    %362 = math.tanh %361 : vector<2x32xf32>
    %363 = vector.extract_strided_slice %348 {offsets = [0, 96], sizes = [2, 32], strides = [1, 1]} : vector<2x128xf32> to vector<2x32xf32>
    %364 = arith.negf %363 : vector<2x32xf32>
    %365 = math.exp %364 : vector<2x32xf32>
    %cst_79 = arith.constant 1.000000e+00 : f32
    %366 = vector.broadcast %cst_79 : f32 to vector<2x32xf32>
    %367 = arith.addf %366, %365 : vector<2x32xf32>
    %368 = arith.divf %366, %367 : vector<2x32xf32>
    %369 = arith.mulf %360, %311 : vector<2x32xf32>
    %370 = arith.mulf %354, %362 : vector<2x32xf32>
    %371 = arith.addf %369, %370 : vector<2x32xf32>
    %372 = math.tanh %371 : vector<2x32xf32>
    %373 = arith.mulf %368, %372 : vector<2x32xf32>
    %374 = arith.truncf %373 : vector<2x32xf32> to vector<2x32xbf16>
    %cst_80 = arith.constant dense<0.000000e+00> : vector<2x128xf32>
    %375 = tpu.matmul %374, %8, %cst_80 {dimension_numbers = #tpu.dot_dimension_numbers<[1], [0], [0], [1], [0, 0, 1, 1], [], []>} : vector<2x32xbf16>, vector<32x128xbf16>, vector<2x128xf32> -> vector<2x128xf32>
    %376 = arith.addf %375, %9 : vector<2x128xf32>
    %377 = arith.truncf %345 : vector<2x128xf32> to vector<2x128xbf16>
    %cst_81 = arith.constant dense<0.000000e+00> : vector<2x512xf32>
    %378 = tpu.matmul %377, %6, %cst_81 {dimension_numbers = #tpu.dot_dimension_numbers<[1], [0], [0], [1], [0, 0, 1, 1], [], []>} : vector<2x128xbf16>, vector<128x512xbf16>, vector<2x512xf32> -> vector<2x512xf32>
    %c12 = arith.constant 12 : index
    %c0_82 = arith.constant 0 : index
    %379 = vector.load %arg10[%c12, %c0_82] : memref<16x512xf32, #tpu.memory_space<vmem>>, vector<2x512xf32>
    %380 = arith.addf %378, %379 : vector<2x512xf32>
    %381 = vector.extract_strided_slice %380 {offsets = [0, 0], sizes = [2, 128], strides = [1, 1]} : vector<2x512xf32> to vector<2x128xf32>
    %382 = arith.negf %381 : vector<2x128xf32>
    %383 = math.exp %382 : vector<2x128xf32>
    %cst_83 = arith.constant 1.000000e+00 : f32
    %384 = vector.broadcast %cst_83 : f32 to vector<2x128xf32>
    %385 = arith.addf %384, %383 : vector<2x128xf32>
    %386 = arith.divf %384, %385 : vector<2x128xf32>
    %387 = vector.extract_strided_slice %380 {offsets = [0, 128], sizes = [2, 128], strides = [1, 1]} : vector<2x512xf32> to vector<2x128xf32>
    %388 = arith.negf %387 : vector<2x128xf32>
    %389 = math.exp %388 : vector<2x128xf32>
    %cst_84 = arith.constant 1.000000e+00 : f32
    %390 = vector.broadcast %cst_84 : f32 to vector<2x128xf32>
    %391 = arith.addf %390, %389 : vector<2x128xf32>
    %392 = arith.divf %390, %391 : vector<2x128xf32>
    %393 = vector.extract_strided_slice %380 {offsets = [0, 256], sizes = [2, 128], strides = [1, 1]} : vector<2x512xf32> to vector<2x128xf32>
    %394 = math.tanh %393 : vector<2x128xf32>
    %395 = vector.extract_strided_slice %380 {offsets = [0, 384], sizes = [2, 128], strides = [1, 1]} : vector<2x512xf32> to vector<2x128xf32>
    %396 = arith.negf %395 : vector<2x128xf32>
    %397 = math.exp %396 : vector<2x128xf32>
    %cst_85 = arith.constant 1.000000e+00 : f32
    %398 = vector.broadcast %cst_85 : f32 to vector<2x128xf32>
    %399 = arith.addf %398, %397 : vector<2x128xf32>
    %400 = arith.divf %398, %399 : vector<2x128xf32>
    %401 = arith.mulf %392, %343 : vector<2x128xf32>
    %402 = arith.mulf %386, %394 : vector<2x128xf32>
    %403 = arith.addf %401, %402 : vector<2x128xf32>
    %404 = math.tanh %403 : vector<2x128xf32>
    %405 = arith.mulf %400, %404 : vector<2x128xf32>
    %406 = arith.truncf %405 : vector<2x128xf32> to vector<2x128xbf16>
    %cst_86 = arith.constant dense<0.000000e+00> : vector<2x128xf32>
    %407 = tpu.matmul %406, %7, %cst_86 {dimension_numbers = #tpu.dot_dimension_numbers<[1], [0], [0], [1], [0, 0, 1, 1], [], []>} : vector<2x128xbf16>, vector<128x128xbf16>, vector<2x128xf32> -> vector<2x128xf32>
    %408 = arith.addf %407, %376 : vector<2x128xf32>
    %409 = vector.extract_strided_slice %408 {offsets = [0, 0], sizes = [2, 32], strides = [1, 1]} : vector<2x128xf32> to vector<2x32xf32>
    %410 = arith.negf %409 : vector<2x32xf32>
    %411 = math.exp %410 : vector<2x32xf32>
    %cst_87 = arith.constant 1.000000e+00 : f32
    %412 = vector.broadcast %cst_87 : f32 to vector<2x32xf32>
    %413 = arith.addf %412, %411 : vector<2x32xf32>
    %414 = arith.divf %412, %413 : vector<2x32xf32>
    %415 = vector.extract_strided_slice %408 {offsets = [0, 32], sizes = [2, 32], strides = [1, 1]} : vector<2x128xf32> to vector<2x32xf32>
    %416 = arith.negf %415 : vector<2x32xf32>
    %417 = math.exp %416 : vector<2x32xf32>
    %cst_88 = arith.constant 1.000000e+00 : f32
    %418 = vector.broadcast %cst_88 : f32 to vector<2x32xf32>
    %419 = arith.addf %418, %417 : vector<2x32xf32>
    %420 = arith.divf %418, %419 : vector<2x32xf32>
    %421 = vector.extract_strided_slice %408 {offsets = [0, 64], sizes = [2, 32], strides = [1, 1]} : vector<2x128xf32> to vector<2x32xf32>
    %422 = math.tanh %421 : vector<2x32xf32>
    %423 = vector.extract_strided_slice %408 {offsets = [0, 96], sizes = [2, 32], strides = [1, 1]} : vector<2x128xf32> to vector<2x32xf32>
    %424 = arith.negf %423 : vector<2x32xf32>
    %425 = math.exp %424 : vector<2x32xf32>
    %cst_89 = arith.constant 1.000000e+00 : f32
    %426 = vector.broadcast %cst_89 : f32 to vector<2x32xf32>
    %427 = arith.addf %426, %425 : vector<2x32xf32>
    %428 = arith.divf %426, %427 : vector<2x32xf32>
    %429 = arith.mulf %420, %371 : vector<2x32xf32>
    %430 = arith.mulf %414, %422 : vector<2x32xf32>
    %431 = arith.addf %429, %430 : vector<2x32xf32>
    %432 = math.tanh %431 : vector<2x32xf32>
    %433 = arith.mulf %428, %432 : vector<2x32xf32>
    %434 = arith.truncf %433 : vector<2x32xf32> to vector<2x32xbf16>
    %cst_90 = arith.constant dense<0.000000e+00> : vector<2x128xf32>
    %435 = tpu.matmul %434, %8, %cst_90 {dimension_numbers = #tpu.dot_dimension_numbers<[1], [0], [0], [1], [0, 0, 1, 1], [], []>} : vector<2x32xbf16>, vector<32x128xbf16>, vector<2x128xf32> -> vector<2x128xf32>
    %436 = arith.addf %435, %9 : vector<2x128xf32>
    %437 = arith.truncf %405 : vector<2x128xf32> to vector<2x128xbf16>
    %cst_91 = arith.constant dense<0.000000e+00> : vector<2x512xf32>
    %438 = tpu.matmul %437, %6, %cst_91 {dimension_numbers = #tpu.dot_dimension_numbers<[1], [0], [0], [1], [0, 0, 1, 1], [], []>} : vector<2x128xbf16>, vector<128x512xbf16>, vector<2x512xf32> -> vector<2x512xf32>
    %c14 = arith.constant 14 : index
    %c0_92 = arith.constant 0 : index
    %439 = vector.load %arg10[%c14, %c0_92] : memref<16x512xf32, #tpu.memory_space<vmem>>, vector<2x512xf32>
    %440 = arith.addf %438, %439 : vector<2x512xf32>
    %441 = vector.extract_strided_slice %440 {offsets = [0, 0], sizes = [2, 128], strides = [1, 1]} : vector<2x512xf32> to vector<2x128xf32>
    %442 = arith.negf %441 : vector<2x128xf32>
    %443 = math.exp %442 : vector<2x128xf32>
    %cst_93 = arith.constant 1.000000e+00 : f32
    %444 = vector.broadcast %cst_93 : f32 to vector<2x128xf32>
    %445 = arith.addf %444, %443 : vector<2x128xf32>
    %446 = arith.divf %444, %445 : vector<2x128xf32>
    %447 = vector.extract_strided_slice %440 {offsets = [0, 128], sizes = [2, 128], strides = [1, 1]} : vector<2x512xf32> to vector<2x128xf32>
    %448 = arith.negf %447 : vector<2x128xf32>
    %449 = math.exp %448 : vector<2x128xf32>
    %cst_94 = arith.constant 1.000000e+00 : f32
    %450 = vector.broadcast %cst_94 : f32 to vector<2x128xf32>
    %451 = arith.addf %450, %449 : vector<2x128xf32>
    %452 = arith.divf %450, %451 : vector<2x128xf32>
    %453 = vector.extract_strided_slice %440 {offsets = [0, 256], sizes = [2, 128], strides = [1, 1]} : vector<2x512xf32> to vector<2x128xf32>
    %454 = math.tanh %453 : vector<2x128xf32>
    %455 = vector.extract_strided_slice %440 {offsets = [0, 384], sizes = [2, 128], strides = [1, 1]} : vector<2x512xf32> to vector<2x128xf32>
    %456 = arith.negf %455 : vector<2x128xf32>
    %457 = math.exp %456 : vector<2x128xf32>
    %cst_95 = arith.constant 1.000000e+00 : f32
    %458 = vector.broadcast %cst_95 : f32 to vector<2x128xf32>
    %459 = arith.addf %458, %457 : vector<2x128xf32>
    %460 = arith.divf %458, %459 : vector<2x128xf32>
    %461 = arith.mulf %452, %403 : vector<2x128xf32>
    %462 = arith.mulf %446, %454 : vector<2x128xf32>
    %463 = arith.addf %461, %462 : vector<2x128xf32>
    %464 = math.tanh %463 : vector<2x128xf32>
    %465 = arith.mulf %460, %464 : vector<2x128xf32>
    %466 = arith.truncf %465 : vector<2x128xf32> to vector<2x128xbf16>
    %cst_96 = arith.constant dense<0.000000e+00> : vector<2x128xf32>
    %467 = tpu.matmul %466, %7, %cst_96 {dimension_numbers = #tpu.dot_dimension_numbers<[1], [0], [0], [1], [0, 0, 1, 1], [], []>} : vector<2x128xbf16>, vector<128x128xbf16>, vector<2x128xf32> -> vector<2x128xf32>
    %468 = arith.addf %467, %436 : vector<2x128xf32>
    %469 = vector.extract_strided_slice %468 {offsets = [0, 0], sizes = [2, 32], strides = [1, 1]} : vector<2x128xf32> to vector<2x32xf32>
    %470 = arith.negf %469 : vector<2x32xf32>
    %471 = math.exp %470 : vector<2x32xf32>
    %cst_97 = arith.constant 1.000000e+00 : f32
    %472 = vector.broadcast %cst_97 : f32 to vector<2x32xf32>
    %473 = arith.addf %472, %471 : vector<2x32xf32>
    %474 = arith.divf %472, %473 : vector<2x32xf32>
    %475 = vector.extract_strided_slice %468 {offsets = [0, 32], sizes = [2, 32], strides = [1, 1]} : vector<2x128xf32> to vector<2x32xf32>
    %476 = arith.negf %475 : vector<2x32xf32>
    %477 = math.exp %476 : vector<2x32xf32>
    %cst_98 = arith.constant 1.000000e+00 : f32
    %478 = vector.broadcast %cst_98 : f32 to vector<2x32xf32>
    %479 = arith.addf %478, %477 : vector<2x32xf32>
    %480 = arith.divf %478, %479 : vector<2x32xf32>
    %481 = vector.extract_strided_slice %468 {offsets = [0, 64], sizes = [2, 32], strides = [1, 1]} : vector<2x128xf32> to vector<2x32xf32>
    %482 = math.tanh %481 : vector<2x32xf32>
    %483 = vector.extract_strided_slice %468 {offsets = [0, 96], sizes = [2, 32], strides = [1, 1]} : vector<2x128xf32> to vector<2x32xf32>
    %484 = arith.negf %483 : vector<2x32xf32>
    %485 = math.exp %484 : vector<2x32xf32>
    %cst_99 = arith.constant 1.000000e+00 : f32
    %486 = vector.broadcast %cst_99 : f32 to vector<2x32xf32>
    %487 = arith.addf %486, %485 : vector<2x32xf32>
    %488 = arith.divf %486, %487 : vector<2x32xf32>
    %489 = arith.mulf %480, %431 : vector<2x32xf32>
    %490 = arith.mulf %474, %482 : vector<2x32xf32>
    %491 = arith.addf %489, %490 : vector<2x32xf32>
    %492 = math.tanh %491 : vector<2x32xf32>
    %493 = arith.mulf %488, %492 : vector<2x32xf32>
    %494 = arith.truncf %493 : vector<2x32xf32> to vector<2x32xbf16>
    %c0_100 = arith.constant 0 : index
    %c0_101 = arith.constant 0 : index
    %495 = vector.load %arg7[%c0_100, %c0_101] : memref<32x128xbf16, #tpu.memory_space<vmem>>, vector<32x128xbf16>
    %cst_102 = arith.constant dense<0.000000e+00> : vector<2x128xf32>
    %496 = tpu.matmul %494, %495, %cst_102 {dimension_numbers = #tpu.dot_dimension_numbers<[1], [0], [0], [1], [0, 0, 1, 1], [], []>} : vector<2x32xbf16>, vector<32x128xbf16>, vector<2x128xf32> -> vector<2x128xf32>
    %c0_103 = arith.constant 0 : index
    %c0_104 = arith.constant 0 : index
    %497 = vector.load %arg8[%c0_103, %c0_104] : memref<2x128xf32, #tpu.memory_space<vmem>>, vector<2x128xf32>
    %498 = arith.addf %496, %497 : vector<2x128xf32>
    %c0_105 = arith.constant 0 : index
    %c0_106 = arith.constant 0 : index
    %499 = vector.load %arg9[%c0_105, %c0_106] : memref<2x128xf32, #tpu.memory_space<vmem>>, vector<2x128xf32>
    tpu.vector_store %arg9[%c0_105, %c0_106], %498 {strides = array<i32>} : memref<2x128xf32, #tpu.memory_space<vmem>>, vector<2x128xf32>,
    return
  }
}

</mosaic_0001>

<bundles_post_ra>
// kernel: tpu_custom_call.1
= control target key start
LH: loop header
LB: loop body
LE: loop exit
PB: predicated region body
PF: predicated region fallthrough
CT: control target
= control target key end

     0   :  { %14 = vsyncpa [#allocation4], 0  ;;  %s4354_s0 = inlined_call_operand.vmem [shape: bf16[16,4], index: 0, kind: input, shape index: {}]   ;;  %s4355_s1 = inlined_call_operand.hbm [shape: bf16[4,512], index: 1, kind: input, shape index: {}]   ;;  %s4356_s2 = inlined_call_operand.hbm [shape: bf16[128,512], index: 2, kind: input, shape index: {}]   ;;  %s4357_s3 = inlined_call_operand.hbm [shape: f32[16,512], index: 3, kind: input, shape index: {}]   ;;  %s4358_s4 = inlined_call_operand.hbm [shape: bf16[128,128], index: 4, kind: input, shape index: {}]   ;;  %s4359_s5 = inlined_call_operand.vmem [shape: bf16[32,128], index: 5, kind: input, shape index: {}]   ;;  %s4360_s6 = inlined_call_operand.hbm [shape: f32[2,128], index: 6, kind: input, shape index: {}]   ;;  %s4361_s7 = inlined_call_operand.vmem [shape: bf16[32,128], index: 7, kind: input, shape index: {}]   ;;  %s4362_s8 = inlined_call_operand.vmem [shape: f32[2,128], index: 8, kind: input, shape index: {}]   ;;  %s4363_s9 = inlined_call_operand.hbm [shape: f32[2,128], index: 9, kind: output, shape index: {}]  }
   0x1   :  { %15 = vsyncpa [#allocation7], 0 }
   0x2   :  { %16 = vsyncpa [#allocation10], 0 }
   0x3   :  { %17 = vsyncpa [#allocation5], 0  ;;  %s3364_s30 = smov [#allocation6]   ;;  %s3224_s13 = scalar_lea.hbm %s4356_s2, 4096 }
   0x4   :  { %s35_s10 = sshll.u32 %s3364_s30, 4  ;;  %p3225_p0 = scmp.ne.s32.totalorder %s4356_s2, %s3224_s13  ;;  %s36_s10 = int_to_ptr.vmem [resolvable:$true] %s35_s10 }
   0x5   :  { %p3228_p1 = scmp.lt.u32.totalorder %s3224_s13, %s4356_s2 }
   0x7   :  { %p3230_p2 = pnand %p3228_p1, %p3225_p0 }
   0x9   :  { %3233 = shalt.err (!%p3230_p2)
}
   0xa   :  { %s3234_s18 = scalar_lea.vmem %s36_s10, 4096  ;;  %p3239_p4 = scmp.lt.s32.totalorder %s36_s10, %s36_s10 }
   0xb   :  { %p3235_p3 = scmp.ne.s32.totalorder %s36_s10, %s3234_s18  ;;  %p3240_p5 = scmp.lt.s32.totalorder %s3234_s18, %s3234_s18 }
   0xd   :  { %p3241_p6 = por %p3240_p5, %p3239_p4 }
   0xf   :  { %p3242_p7 = pnand %p3241_p6, %p3235_p3 }
  0x11   :  { %3245 = shalt.err (!%p3242_p7)
}
  0x12   :  { %s3365_s19 = smov 256   ;;  %s3366_s20 = smov 16  }
  0x13   :  { %41 = dma.hbm_to_vmem [thread:$0]  %s4356_s2, 4096, %s36_s10, [#allocation7], %s3365_s19, %s3365_s19, %s3366_s20  }
  0x14   :  { %s3367_s23 = smov [#allocation9]   ;;  %s3246_s27 = scalar_lea.hbm %s4358_s4, 1024 }
  0x15   :  { %s59_s24 = sshll.u32 %s3367_s23, 4  ;;  %p3247_p8 = scmp.ne.s32.totalorder %s4358_s4, %s3246_s27  ;;  %s60_s24 = int_to_ptr.vmem [resolvable:$true] %s59_s24 }
  0x16   :  { %p3250_p9 = scmp.lt.u32.totalorder %s3246_s27, %s4358_s4 }
  0x18   :  { %p3252_p10 = pnand %p3250_p9, %p3247_p8 }
  0x1a   :  { %3255 = shalt.err (!%p3252_p10)
}
  0x1b   :  { %s3256_s12 = scalar_lea.vmem %s60_s24, 1024  ;;  %p3261_p12 = scmp.lt.s32.totalorder %s60_s24, %s60_s24 }
  0x1c   :  { %p3257_p11 = scmp.ne.s32.totalorder %s60_s24, %s3256_s12  ;;  %p3262_p13 = scmp.lt.s32.totalorder %s3256_s12, %s3256_s12 }
  0x1e   :  { %p3263_p0 = por %p3262_p13, %p3261_p12 }
  0x20   :  { %p3264_p1 = pnand %p3263_p0, %p3257_p11 }
  0x22   :  { %3267 = shalt.err (!%p3264_p1)
}
  0x23   :  { %s3368_s2 = smov 64   ;;  %s3369_s10 = smov 4  }
  0x24   :  { %65 = dma.hbm_to_vmem [thread:$0]  %s4358_s4, 1024, %s60_s24, [#allocation10], %s3368_s2, %s3368_s2, %s3369_s10  }
  0x25   :  { %s3370_s15 = smov [#allocation3]   ;;  %s3371_s17 = smov [#allocation8]  }
  0x26   :  { %s26_s16 = sshll.u32 %s3370_s15, 4  ;;  %s47_s18 = sshll.u32 %s3371_s17, 4  ;;  %s27_s16 = int_to_ptr.vmem [resolvable:$true] %s26_s16  ;;  %s3456_s18 = int_to_ptr.vmem [resolvable:$true] %s47_s18 }
  0x27   :  { %s3268_s21 = scalar_lea.hbm %s4355_s1, 128 }
  0x28   :  { %p3269_p2 = scmp.ne.s32.totalorder %s4355_s1, %s3268_s21  ;;  %p3272_p3 = scmp.lt.u32.totalorder %s3268_s21, %s4355_s1 }
  0x2a   :  { %p3274_p4 = pnand %p3272_p3, %p3269_p2 }
  0x2c   :  { %3277 = shalt.err (!%p3274_p4)
}
  0x2d   :  { %s3278_s4 = scalar_lea.vmem %s27_s16, 128  ;;  %p3283_p6 = scmp.lt.s32.totalorder %s27_s16, %s27_s16 }
  0x2e   :  { %p3279_p5 = scmp.ne.s32.totalorder %s27_s16, %s3278_s4  ;;  %p3284_p7 = scmp.lt.s32.totalorder %s3278_s4, %s3278_s4 }
  0x30   :  { %p3285_p8 = por %p3284_p7, %p3283_p6 }
  0x32   :  { %p3286_p9 = pnand %p3285_p8, %p3279_p5 }
  0x34   :  { %3289 = shalt.err (!%p3286_p9)
}
  0x35   :  { %29 = dma.hbm_to_vmem [thread:$0]  %s4355_s1, 128, %s27_s16, [#allocation4]  }
  0x36   :  { %s3290_s30 = scalar_lea.hbm %s4357_s3, 1024 }
  0x37   :  { %p3291_p10 = scmp.ne.s32.totalorder %s4357_s3, %s3290_s30  ;;  %p3294_p11 = scmp.lt.u32.totalorder %s3290_s30, %s4357_s3 }
  0x39   :  { %p3296_p12 = pnand %p3294_p11, %p3291_p10 }
  0x3b   :  { %3299 = shalt.err (!%p3296_p12)
}
  0x3c   :  { %s3300_s14 = scalar_lea.vmem %s3456_s18, 1024  ;;  %p3305_p0 = scmp.lt.s32.totalorder %s3456_s18, %s3456_s18 }
  0x3d   :  { %p3301_p13 = scmp.ne.s32.totalorder %s3456_s18, %s3300_s14  ;;  %p3306_p1 = scmp.lt.s32.totalorder %s3300_s14, %s3300_s14 }
  0x3f   :  { %p3307_p2 = por %p3306_p1, %p3305_p0 }
  0x41   :  { %p3308_p3 = pnand %p3307_p2, %p3301_p13 }
  0x43   :  { %3311 = shalt.err (!%p3308_p3)
}
  0x44   :  { %s3372_s1 = smov 512   ;;  %s3373_s15 = smov 32  }
  0x45   :  { %53 = dma.hbm_to_vmem [thread:$0]  %s4357_s3, 1024, %s3456_s18, [#allocation7], %s3372_s1, %s3372_s1, %s3373_s15  }
  0x46   :  { %s3374_s19 = smov [#allocation11]   ;;  %s3312_s23 = scalar_lea.hbm %s4360_s6, 32 }
  0x47   :  { %s74_s20 = sshll.u32 %s3374_s19, 4  ;;  %p3313_p4 = scmp.ne.s32.totalorder %s4360_s6, %s3312_s23  ;;  %s75_s20 = int_to_ptr.vmem [resolvable:$true] %s74_s20 }
  0x48   :  { %p3316_p5 = scmp.lt.u32.totalorder %s3312_s23, %s4360_s6 }
  0x4a   :  { %p3318_p6 = pnand %p3316_p5, %p3313_p4 }
  0x4c   :  { %3321 = shalt.err (!%p3318_p6)
}
  0x4d   :  { %s3322_s27 = scalar_lea.vmem %s75_s20, 32  ;;  %p3327_p8 = scmp.lt.s32.totalorder %s75_s20, %s75_s20 }
  0x4e   :  { %p3323_p7 = scmp.ne.s32.totalorder %s75_s20, %s3322_s27  ;;  %p3328_p9 = scmp.lt.s32.totalorder %s3322_s27, %s3322_s27 }
  0x50   :  { %p3329_p10 = por %p3328_p9, %p3327_p8 }
  0x52   :  { %p3330_p11 = pnand %p3329_p10, %p3323_p7 }
  0x54   :  { %3333 = shalt.err (!%p3330_p11)
}
  0x55   :  { %77 = dma.hbm_to_vmem [thread:$0]  %s4360_s6, 32, %s75_s20, [#allocation10]  }
  0x56   :  { %3356 = dma.done.wait [#allocation4], 128  }
  0x57   :  { %3357 = vsyncadd [#allocation4], 4294967168 }
  0x58   :  { %3358 = dma.done.wait [#allocation7], 5120  }
  0x59   :  { %3359 = vsyncadd [#allocation7], 4294962176 }
  0x5a   :  { %3360 = dma.done.wait [#allocation10], 1056  }
  0x5b   :  { %3361 = vsyncadd [#allocation10], 4294966240  ;;  %v119_v0 = vlaneseq  ;;  %v3375_v1 = vmov 1983009808   ;;  %v4366_v3 = vmov 0   ;;  %v100_v7 = vld [vmem:[#allocation3] sm:$0xff] }
  0x5c   :  { %v117_v2 = vunpack.c.l.s4 %v3375_v1  ;;  %181 = vmatprep.mubr.bf16.mxu0 %v4366_v3  ;;  %224 = vmatprep.mubr.bf16.mxu1 %v4366_v3  ;;  %vm136_vm0 = vcmask 1041408   ;;  %v115_v9 = vcombine.high %v100_v7, %v100_v7  ;;  %v2920_v15 = vld [vmem:[%s4354_s0] sm:$0xff]   ;;  %v3505_v16 = vld [vmem:[#allocation6 + $0x4] ss:$16 sps:$4 sm:$0xff]   ;;  %vm132_vm1 = vcmask 31744   ;;  %v3644_v54 = vld [vmem:[#allocation9 + $0x18] sm:$0xff]  }
  0x5d   :  { %v120_v4 = vshrl.u32 %v119_v0, 7  ;;  %4387 = vst [vmem:[#allocation17_spill] sm:$0xff] %v3505_v16  ;;  %v3510_v17 = vld [vmem:[%s4359_s5] sm:$0xff]   ;;  %v4364_v18 = vmov 0.0   ;;  %v3513_v19 = vld [vmem:[#allocation6] ss:$16 sps:$4 sm:$0xff]  }
  0x5e   :  { %v118_v5 = vunpack.c.0.s8 %v117_v2  ;;  %v3516_v20 = vld [vmem:[#allocation6 + $0x24] ss:$16 sps:$4 sm:$0xff]   ;;  %vm3378_vm2 = vmmov 0   ;;  %v3527_v22 = vld [vmem:[#allocation6 + $0xc] ss:$16 sps:$4 sm:$0xff]   ;;  %vm308_vm3 = vcmask 261120  }
  0x5f   :  { %v3522_v21 = vld [vmem:[%s4359_s5 + $0x8] sm:$0xff]   ;;  %4388 = vst [vmem:[#allocation18_spill] sm:$0xff] %v3527_v22  ;;  %v3537_v25 = vld [vmem:[#allocation6 + $0x8] ss:$16 sps:$4 sm:$0xff]   ;;  %v3540_v26 = vld [vmem:[#allocation6 + $0x2c] ss:$16 sps:$4 sm:$0xff]  }
  0x60   :  { %v121_v6 = vsub.s32 %v118_v5, %v120_v4  ;;  %v3530_v23 = vld [vmem:[#allocation6 + $0x20] ss:$16 sps:$4 sm:$0xff]   ;;  %v3534_v24 = vld [vmem:[#allocation6 + $0x44] ss:$16 sps:$4 sm:$0xff]   ;;  %v3550_v29 = vld [vmem:[#allocation6 + $0x28] ss:$16 sps:$4 sm:$0xff]  }
  0x61   :  { %v3543_v27 = vld [vmem:[#allocation6 + $0x40] ss:$16 sps:$4 sm:$0xff]   ;;  %v3547_v28 = vld [vmem:[#allocation6 + $0x64] ss:$16 sps:$4 sm:$0xff]   ;;  %v3554_v30 = vld [vmem:[#allocation6 + $0x4c] ss:$16 sps:$4 sm:$0xff]  }
  0x62   :  { %v122_v8 = vrot.slane %v100_v7, %v121_v6  ;;  %v129_v12 = vrot.slane %v115_v9, %v121_v6  ;;  %v3557_v31 = vld [vmem:[#allocation6 + $0x60] ss:$16 sps:$4 sm:$0xff]   ;;  %v3560_v32 = vld [vmem:[#allocation6 + $0x84] ss:$16 sps:$4 sm:$0xff]   ;;  %v3563_v33 = vld [vmem:[#allocation6 + $0x48] ss:$16 sps:$4 sm:$0xff]  }
  0x63   :  { %v3566_v34 = vld [vmem:[#allocation6 + $0x6c] ss:$16 sps:$4 sm:$0xff]   ;;  %v3569_v35 = vld [vmem:[#allocation6 + $0x80] ss:$16 sps:$4 sm:$0xff]   ;;  %v3571_v36 = vld [vmem:[#allocation6 + $0x68] ss:$16 sps:$4 sm:$0xff]  }
  0x64   :  { %v130_v10 = vcombine.high %v122_v8, %v122_v8  ;;  %v138_v11 = vsel %vm136_vm0, %v122_v8, 0  ;;  %v131_v13 = vcombine.high %v129_v12, %v129_v12  ;;  %v144_v14 = vsel %vm136_vm0, %v129_v12, 0  ;;  %v3573_v37 = vld [vmem:[#allocation6 + $0xa4] ss:$16 sps:$4 sm:$0xff]   ;;  %v3576_v38 = vld [vmem:[#allocation6 + $0x8c] ss:$16 sps:$4 sm:$0xff]  }
  0x65   :  { %v3579_v39 = vld [vmem:[#allocation6 + $0xa0] ss:$16 sps:$4 sm:$0xff]   ;;  %v3582_v40 = vld [vmem:[#allocation6 + $0xc4] ss:$16 sps:$4 sm:$0xff]   ;;  %v3585_v41 = vld [vmem:[#allocation6 + $0x88] ss:$16 sps:$4 sm:$0xff]  }
  0x66   :  { %2444 = vmatprep.subr.msk.bf16.mxu0 %vm136_vm0, %v130_v10  ;;  %2446 = vmatprep.subr.msk.bf16.mxu1 %vm136_vm0, %v131_v13  ;;  %v3590_v42 = vld [vmem:[#allocation6 + $0xac] ss:$16 sps:$4 sm:$0xff]   ;;  %v3593_v43 = vld [vmem:[#allocation6 + $0xc0] ss:$16 sps:$4 sm:$0xff]   ;;  %v3596_v44 = vld [vmem:[#allocation6 + $0xe4] ss:$16 sps:$4 sm:$0xff]  }
  0x67   :  { %150 = vmatpush1.bf16.msra.mxu0 %v138_v11  ;;  %193 = vmatpush1.bf16.msra.mxu1 %v144_v14  ;;  %v3599_v45 = vld [vmem:[#allocation6 + $0xa8] ss:$16 sps:$4 sm:$0xff]   ;;  %v3602_v46 = vld [vmem:[#allocation6 + $0xcc] ss:$16 sps:$4 sm:$0xff]   ;;  %v3605_v47 = vld [vmem:[#allocation6 + $0xe0] ss:$16 sps:$4 sm:$0xff]  }
  0x68   :  { %2631 = vmatprep.subr.bf16.mxu0 %v4364_v18  ;;  %516 = vmatprep.subr.bf16.mxu1 %v3505_v16  ;;  %v3609_v48 = vld [vmem:[#allocation6 + $0xc8] ss:$16 sps:$4 sm:$0xff]   ;;  %v3612_v49 = vld [vmem:[#allocation6 + $0xec] ss:$16 sps:$4 sm:$0xff]   ;;  %v3632_v51 = vld [vmem:[#allocation9] sm:$0xff]   ;;  %s3379_s21 = smov [#allocation12]  }
  0x69   :  { %v3617_v50 = vld [vmem:[#allocation6 + $0xe8] ss:$16 sps:$4 sm:$0xff]   ;;  %v3640_v53 = vld [vmem:[#allocation9 + $0x10] sm:$0xff]   ;;  %v3648_v55 = vld [vmem:[#allocation9 + $0x20] sm:$0xff]  }
  0x6a   :  { %2445 = vmatmul.mubr.msk.bf16.vlgmr.msra.gmra.mrb[0].mxu0 %vm132_vm1, %v2920_v15  ;;  %2447 = vmatmul.mubr.msk.bf16.vlgmr.msra.gmra.mrb[0].mxu1 %vm132_vm1, %v2920_v15  ;;  %v3636_v52 = vld [vmem:[#allocation9 + $0x8] sm:$0xff]   ;;  %v3655_v57 = vld [vmem:[#allocation9 + $0x30] sm:$0xff]   ;;  %v3659_v58 = vld [vmem:[#allocation9 + $0x38] sm:$0xff]  }
  0x6b   :  { %2632 = vmatpush3.bf16.msra.mxu0 %v3510_v17  ;;  %2635 = vmatprep.mubr.msk.bf16.mxu0 %vm3378_vm2, %v4364_v18  ;;  %v3652_v56 = vld [vmem:[#allocation9 + $0x28] sm:$0xff]   ;;  %4390 = vst [vmem:[#allocation20_spill] sm:$0xff] %v3655_v57  ;;  %4391 = vst [vmem:[#allocation21_spill] sm:$0xff] %v3659_v58  ;;  %v101_v59 = vld [vmem:[#allocation8] sm:$0xff] }
  0x6c   :  { %2633 = vmatprep.subr.bf16.mxu0 %v4364_v18  ;;  %517 = vmatpush1.bf16.msra.mxu1 %v3513_v19  ;;  %4389 = vst [vmem:[#allocation19_spill] sm:$0xff] %v3652_v56  ;;  %v102_v60 = vld [vmem:[#allocation8 + $0x8] sm:$0xff]  ;;  %v103_v61 = vld [vmem:[#allocation8 + $0x10] sm:$0xff]  ;;  %v105_v63 = vld [vmem:[#allocation8 + $0x20] sm:$0xff] }
  0x6d   :  { %548 = vmatprep.mubr.bf16.mxu1 %v4366_v3  ;;  %518 = vmatprep.subr.bf16.mxu1 %v3516_v20  ;;  %v104_v0 = vld [vmem:[#allocation8 + $0x18] sm:$0xff]  ;;  %v106_v4 = vld [vmem:[#allocation8 + $0x28] sm:$0xff]  ;;  %v107_v6 = vld [vmem:[#allocation8 + $0x30] sm:$0xff] }
  0x6e   :  { %v108_v11 = vld [vmem:[#allocation8 + $0x38] sm:$0xff] }
  0x6f   :  { %2634 = vmatpush3.bf16.msra.mxu0 %v3522_v21 }
  0x70   :  { %557 = vmatprep.subr.bf16.mxu0 %v3527_v22  ;;  %519 = vmatpush1.bf16.msra.mxu1 %v3530_v23 }
  0x71   :  { %520 = vmatprep.subr.bf16.mxu1 %v3534_v24 }
  0x72   :  { %2636 = vmatmul.mubr.bf16.vlgmr.msra.gmra.mrb[4].mxu0 %v4366_v3 }
  0x73   :  { %558 = vmatpush1.bf16.msra.mxu0 %v3537_v25  ;;  %589 = vmatprep.mubr.bf16.mxu0 %v4366_v3 }
  0x74   :  { %559 = vmatprep.subr.bf16.mxu0 %v3540_v26  ;;  %521 = vmatpush1.bf16.msra.mxu1 %v3543_v27 }
  0x75   :  { %522 = vmatprep.subr.bf16.mxu1 %v3547_v28 }
  0x77   :  { %560 = vmatpush1.bf16.msra.mxu0 %v3550_v29 }
  0x78   :  { %561 = vmatprep.subr.bf16.mxu0 %v3554_v30  ;;  %523 = vmatpush1.bf16.msra.mxu1 %v3557_v31 }
  0x79   :  { %524 = vmatprep.subr.bf16.mxu1 %v3560_v32 }
  0x7b   :  { %562 = vmatpush1.bf16.msra.mxu0 %v3563_v33 }
  0x7c   :  { %563 = vmatprep.subr.bf16.mxu0 %v3566_v34  ;;  %525 = vmatpush1.bf16.msra.mxu1 %v3569_v35 }
  0x7d   :  { %526 = vmatprep.subr.bf16.mxu1 %v3573_v37 }
  0x7f   :  { %564 = vmatpush1.bf16.msra.mxu0 %v3571_v36 }
  0x80   :  { %565 = vmatprep.subr.bf16.mxu0 %v3576_v38  ;;  %527 = vmatpush1.bf16.msra.mxu1 %v3579_v39 }
  0x81   :  { %528 = vmatprep.subr.bf16.mxu1 %v3582_v40 }
  0x83   :  { %566 = vmatpush1.bf16.msra.mxu0 %v3585_v41 }
  0x84   :  { %567 = vmatprep.subr.bf16.mxu0 %v3590_v42  ;;  %529 = vmatpush1.bf16.msra.mxu1 %v3593_v43 }
  0x85   :  { %530 = vmatprep.subr.bf16.mxu1 %v3596_v44 }
  0x87   :  { %568 = vmatpush1.bf16.msra.mxu0 %v3599_v45 }
  0x88   :  { %569 = vmatprep.subr.bf16.mxu0 %v3602_v46  ;;  %531 = vmatpush1.bf16.msra.mxu1 %v3605_v47 }
  0x89   :  { %2659 = vmatprep.subr.bf16.mxu1 %v4364_v18 }
  0x8b   :  { %570 = vmatpush1.bf16.msra.mxu0 %v3609_v48  ;;  %549 = vmatmul.mubr.bf16.vlgmr.msra.gmra.mrb[4].mxu1 %v4366_v3 }
  0x8c   :  { %571 = vmatprep.subr.bf16.mxu0 %v3612_v49  ;;  %2660 = vmatpush3.bf16.msra.mxu1 %v3510_v17 }
  0x8d   :  { %2663 = vmatprep.mubr.msk.bf16.mxu1 %vm3378_vm2, %v4364_v18  ;;  %2661 = vmatprep.subr.bf16.mxu1 %v4364_v18 }
  0x8f   :  { %572 = vmatpush1.bf16.msra.mxu0 %v3617_v50 }
  0x90   :  { %2639 = vmatprep.subr.bf16.mxu0 %v4364_v18  ;;  %2662 = vmatpush3.bf16.msra.mxu1 %v3522_v21 }
  0x91   :  { %798 = vmatprep.subr.bf16.mxu1 %v3505_v16 }
  0x92   :  { %590 = vmatmul.mubr.bf16.vlgmr.msra.gmra.mrb[8].mxu0 %v4366_v3 }
  0x93   :  { %2655 = vmatprep.mubr.msk.bf16.mxu0 %vm3378_vm2, %v4364_v18  ;;  %2640 = vmatpush3.bf16.msra.mxu0 %v3632_v51 }
  0x94   :  { %2641 = vmatprep.subr.bf16.mxu0 %v4364_v18 }
  0x97   :  { %2642 = vmatpush3.bf16.msra.mxu0 %v3636_v52 }
  0x98   :  { %2643 = vmatprep.subr.bf16.mxu0 %v4364_v18 }
  0x9b   :  { %2644 = vmatpush3.bf16.msra.mxu0 %v3640_v53 }
  0x9c   :  { %2645 = vmatprep.subr.bf16.mxu0 %v4364_v18 }
  0x9f   :  { %2646 = vmatpush3.bf16.msra.mxu0 %v3644_v54 }
  0xa0   :  { %2647 = vmatprep.subr.bf16.mxu0 %v4364_v18 }
  0xa3   :  { %2648 = vmatpush3.bf16.msra.mxu0 %v3648_v55 }
  0xa4   :  { %2649 = vmatprep.subr.bf16.mxu0 %v4364_v18 }
  0xa7   :  { %2650 = vmatpush3.bf16.msra.mxu0 %v3652_v56 }
  0xa8   :  { %2651 = vmatprep.subr.bf16.mxu0 %v4364_v18 }
  0xab   :  { %2652 = vmatpush3.bf16.msra.mxu0 %v3655_v57 }
  0xac   :  { %2653 = vmatprep.subr.bf16.mxu0 %v4364_v18 }
  0xaf   :  { %2654 = vmatpush3.bf16.msra.mxu0 %v3659_v58 }
  0xb0   :  { %839 = vmatprep.subr.bf16.mxu0 %v3527_v22 }
 0x13d   :  { %v183_v62 = vpop.f32.mrb[0].mxu0  ;;  %v226_v5 = vpop.f32.mrb[0].mxu1 }
 0x13e   :  { %v184_v1 = vadd.f32 %v183_v62, %v101_v59  ;;  %v185_v2 = vpop.f32.mrb[1].mxu0  ;;  %v227_v9 = vadd.f32 %v226_v5, %v103_v61  ;;  %v228_v10 = vpop.f32.mrb[1].mxu1 }
 0x13f   :  { %v186_v7 = vadd.f32 %v185_v2, %v102_v60  ;;  %v187_v8 = vpop.f32.mrb[2].mxu0  ;;  %v229_v14 = vadd.f32 %v228_v10, %v104_v0  ;;  %v230_v15 = vpop.f32.mrb[2].mxu1 }
 0x140   :  { %235 = vst [vmem:[#allocation2] sm:$0xff] %v184_v1  ;;  %v188_v12 = vadd.f32 %v187_v8, %v105_v63  ;;  %v189_v13 = vpop.f32.mrb[3].mxu0  ;;  %237 = vst [vmem:[#allocation2 + $0x10] sm:$0xff] %v227_v9  ;;  %v231_v3 = vadd.f32 %v230_v15, %v107_v6  ;;  %v232_v16 = vpop.f32.mrb[3].mxu1 }
 0x141   :  { %236 = vst [vmem:[#allocation2 + $0x8] sm:$0xff] %v186_v7  ;;  %v190_v18 = vadd.f32 %v189_v13, %v106_v4  ;;  %238 = vst [vmem:[#allocation2 + $0x18] sm:$0xff] %v229_v14  ;;  %v233_v59 = vadd.f32 %v232_v16, %v108_v11 }
 0x142   :  { %239 = vst [vmem:[#allocation2 + $0x20] sm:$0xff] %v188_v12  ;;  %241 = vst [vmem:[#allocation2 + $0x30] sm:$0xff] %v231_v3 }
 0x143   :  { %240 = vst [vmem:[#allocation2 + $0x28] sm:$0xff] %v190_v18  ;;  %242 = vst [vmem:[#allocation2 + $0x38] sm:$0xff] %v233_v59 }
 0x147   :  { %v352_v60 = vld [vmem:[#allocation2] sm:$0x3]  ;;  %v354_v3 = vld [vmem:[#allocation2 + $0x10] sm:$0x3] }
 0x148   :  { %v353_v2 = vld [vmem:[#allocation2 + $0x8] sm:$0x3]  ;;  %v355_v6 = vld [vmem:[#allocation2 + $0x18] sm:$0x3] }
 0x15e   :  { %v550_v61 = vpop.f32.mrb[4].mxu1 }
 0x15f   :  { %v551_v62 = vadd.f32 %v550_v61, %v352_v60  ;;  %v552_v1 = vpop.f32.mrb[5].mxu1 }
 0x160   :  { %v553_v63 = vadd.f32 %v552_v1, %v353_v2  ;;  %v554_v5 = vpop.f32.mrb[6].mxu1 }
 0x161   :  { %v2482_v0 = vmul.f32 -1.442695, %v551_v62  ;;  %v555_v8 = vpop.f32.mrb[7].mxu1 }
 0x162   :  { %v2483_v7 = vmul.f32 -1.442695, %v553_v63 }
 0x163   :  { %2981 = vpow2.f32 %v2482_v0 }
 0x164   :  { %2983 = vpow2.f32 %v2483_v7 }
 0x165   :  { %v591_v4 = vpop.f32.mrb[8].mxu0 }
 0x166   :  { %v593_v9 = vpop.f32.mrb[9].mxu0  ;;  %v592_v12 = vadd.f32 %v591_v4, %v354_v3 }
 0x167   :  { %v594_v10 = vadd.f32 %v593_v9, %v355_v6  ;;  %v595_v16 = vpop.f32.mrb[10].mxu0  ;;  %v4392_v9 = vmov 0  }
 0x168   :  { %v596_v18 = vpop.f32.mrb[11].mxu0  ;;  %v3694_v16 = vld [vmem:[#allocation11] sm:$0x3] }
 0x169   :  { %v2484_v11 = vmul.f32 -1.442695, %v594_v10  ;;  %v4393_v10 = vmov 0.0  }
 0x16b   :  { %2985 = vpow2.f32 %v2484_v11 }
 0x16c   :  { %2987 = vtanh.f32 %v592_v12 }
 0x16d   :  { %v2982_v13 = vpop.eup %2981 }
 0x16e   :  { %v2984_v14 = vpop.eup %2983  ;;  %v601_v15 = vadd.f32 1.0, %v2982_v13 }
 0x16f   :  { %v607_v59 = vadd.f32 1.0, %v2984_v14 }
 0x170   :  { %2989 = vrcp.f32 %v601_v15 }
 0x171   :  { %2991 = vrcp.f32 %v607_v59 }
 0x175   :  { %v2986_v60 = vpop.eup %2985 }
 0x176   :  { %v2988_v61 = vpop.eup %2987  ;;  %v614_v63 = vadd.f32 1.0, %v2986_v60 }
 0x178   :  { %2993 = vrcp.f32 %v614_v63 }
 0x17a   :  { %v2990_v62 = vpop.eup %2989 }
 0x17b   :  { %v2992_v2 = vpop.eup %2991  ;;  %v618_v1 = vmul.f32 %v2990_v62, %v2988_v61 }
 0x17c   :  { %v617_v5 = vmul.f32 0.0, %v2992_v2 }
 0x17e   :  { %v3664_v0 = vadd.f32 %v618_v1, %v617_v5 }
 0x180   :  { %2995 = vtanh.f32 %v3664_v0 }
 0x182   :  { %v2994_v8 = vpop.eup %2993 }
 0x18a   :  { %v2996_v7 = vpop.eup %2995 }
 0x18b   :  { %v621_v4 = vmul.f32 %v2996_v7, %v2994_v8 }
 0x18d   :  { %v3667_v6 = vpack.c.bf16 %v621_v4, %v621_v4 }
 0x18f   :  { %2656 = vmatmul.mubr.bf16.vlgmr.msra.gmra.mrb[4].mxu0 %v3667_v6 }
 0x190   :  { %840 = vmatpush1.bf16.msra.mxu0 %v3537_v25  ;;  %871 = vmatprep.mubr.bf16.mxu0 %v4392_v9 }
 0x191   :  { %841 = vmatprep.subr.bf16.mxu0 %v3540_v26 }
 0x194   :  { %842 = vmatpush1.bf16.msra.mxu0 %v3550_v29 }
 0x195   :  { %843 = vmatprep.subr.bf16.mxu0 %v3554_v30 }
 0x198   :  { %844 = vmatpush1.bf16.msra.mxu0 %v3563_v33 }
 0x199   :  { %845 = vmatprep.subr.bf16.mxu0 %v3566_v34 }
 0x19c   :  { %846 = vmatpush1.bf16.msra.mxu0 %v3571_v36 }
 0x19d   :  { %847 = vmatprep.subr.bf16.mxu0 %v3576_v38 }
 0x1a0   :  { %848 = vmatpush1.bf16.msra.mxu0 %v3585_v41 }
 0x1a1   :  { %849 = vmatprep.subr.bf16.mxu0 %v3590_v42 }
 0x1a4   :  { %850 = vmatpush1.bf16.msra.mxu0 %v3599_v45 }
 0x1a5   :  { %851 = vmatprep.subr.bf16.mxu0 %v3602_v46 }
 0x1a8   :  { %852 = vmatpush1.bf16.msra.mxu0 %v3609_v48 }
 0x1a9   :  { %853 = vmatprep.subr.bf16.mxu0 %v3612_v49 }
 0x1ac   :  { %854 = vmatpush1.bf16.msra.mxu0 %v3617_v50 }
 0x1ad   :  { %2687 = vmatprep.subr.bf16.mxu0 %v4393_v10 }
 0x1af   :  { %872 = vmatmul.mubr.bf16.vlgmr.msra.gmra.mrb[12].mxu0 %v3667_v6 }
 0x1b0   :  { %2688 = vmatpush3.bf16.msra.mxu0 %v3510_v17  ;;  %2691 = vmatprep.mubr.msk.bf16.mxu0 %vm3378_vm2, %v4393_v10 }
 0x1b1   :  { %2689 = vmatprep.subr.bf16.mxu0 %v4393_v10 }
 0x1b4   :  { %2690 = vmatpush3.bf16.msra.mxu0 %v3522_v21 }
 0x1b5   :  { %1073 = vmatprep.subr.bf16.mxu0 %v3527_v22 }
 0x262   :  { %v705_v18 = vpop.f32.mrb[4].mxu0 }
 0x263   :  { %v2863_v3 = vadd.f32 %v705_v18, %v3694_v16  ;;  %v2657_v11 = vpop.f32.mrb[5].mxu0 }
 0x264   :  { %v708_v12 = vpop.f32.mrb[6].mxu0 }
 0x265   :  { %v2658_v13 = vpop.f32.mrb[7].mxu0  ;;  %2997 = vtanh.f32 %v2863_v3  ;;  %v2493_v62 = vmul.f32 -1.442695, %v2863_v3 }
 0x267   :  { %2999 = vpow2.f32 %v2493_v62 }
 0x26f   :  { %v2998_v14 = vpop.eup %2997 }
 0x270   :  { %720 = vrot.lane.b32.xlu0 %v2998_v14, %s3368_s2 }
 0x271   :  { %v3000_v2 = vpop.eup %2999 }
 0x272   :  { %v714_v1 = vadd.f32 1.0, %v3000_v2 }
 0x274   :  { %3001 = vrcp.f32 %v714_v1 }
 0x27e   :  { %v3002_v63 = vpop.eup %3001 }
 0x27f   :  { %v718_v7 = vmul.f32 0.0, %v3002_v63 }
 0x282   :  { %v3698_v15 = vpop.f32.mrb[12].mxu0 }
 0x283   :  { %v3700_v59 = vpop.f32.mrb[13].mxu0 }
 0x284   :  { %v877_v60 = vpop.f32.mrb[14].mxu0 }
 0x285   :  { %v878_v61 = vpop.f32.mrb[15].mxu0  ;;  %v782_v60 = vld [vmem:[#allocation2] sm:$0xc] }
 0x286   :  { %v783_v61 = vld [vmem:[#allocation2 + $0x8] sm:$0xc]  ;;  %v790_v62 = vrot.slane %v782_v60, 2 }
 0x287   :  { %v791_v1 = vrot.slane %v783_v61, 2 }
 0x2e2   :  { %v721_v5 = vpop.permute.xlu0 %720 }
 0x2e3   :  { %v723_v8 = vmul.f32 %v3002_v63, %v721_v5 }
 0x2e5   :  { %725 = vrot.lane.b32.xlu0 %v723_v8, %s3373_s15 }
 0x357   :  { %v726_v4 = vpop.permute.xlu0 %725 }
 0x358   :  { %v3703_v18 = vadd.f32 %v726_v4, %v718_v7  ;;  %v785_v4 = vld [vmem:[#allocation2 + $0x18] sm:$0xc] }
 0x35a   :  { %3003 = vtanh.f32 %v3703_v18 }
 0x364   :  { %v3004_v11 = vpop.eup %3003 }
 0x365   :  { %731 = vrot.lane.b32.xlu1 %v3004_v11, %s3368_s2 }
 0x3d7   :  { %v732_v12 = vpop.permute.xlu1 %731 }
 0x3d8   :  { %v734_v3 = vmul.f32 %v3002_v63, %v732_v12 }
 0x3da   :  { %v735_v13 = vpack.c.bf16 %v734_v3, %v734_v3 }
 0x3dc   :  { %737 = vrot.lane.b32.xlu1 %v735_v13, %s3373_s15  ;;  %v793_v13 = vrot.slane %v785_v4, 2 }
 0x3de   :  { %v876_v22 = vadd.f32 %v3700_v59, %v793_v13 }
 0x44e   :  { %v738_v14 = vpop.permute.xlu1 %737 }
 0x44f   :  { %2664 = vmatmul.mubr.msk.bf16.vlgmr.msra.gmra.mrb[8].mxu1 %vm308_vm3, %v738_v14  ;;  %v784_v14 = vld [vmem:[#allocation2 + $0x10] sm:$0xc] }
 0x450   :  { %799 = vmatpush1.bf16.msra.mxu1 %v3513_v19  ;;  %830 = vmatprep.mubr.bf16.mxu1 %v4392_v9 }
 0x451   :  { %800 = vmatprep.subr.bf16.mxu1 %v3516_v20 }
 0x454   :  { %801 = vmatpush1.bf16.msra.mxu1 %v3530_v23 }
 0x455   :  { %802 = vmatprep.subr.bf16.mxu1 %v3534_v24 }
 0x458   :  { %803 = vmatpush1.bf16.msra.mxu1 %v3543_v27 }
 0x459   :  { %804 = vmatprep.subr.bf16.mxu1 %v3547_v28 }
 0x45c   :  { %805 = vmatpush1.bf16.msra.mxu1 %v3557_v31 }
 0x45d   :  { %806 = vmatprep.subr.bf16.mxu1 %v3560_v32 }
 0x460   :  { %807 = vmatpush1.bf16.msra.mxu1 %v3569_v35 }
 0x461   :  { %808 = vmatprep.subr.bf16.mxu1 %v3573_v37 }
 0x464   :  { %809 = vmatpush1.bf16.msra.mxu1 %v3579_v39 }
 0x465   :  { %810 = vmatprep.subr.bf16.mxu1 %v3582_v40 }
 0x468   :  { %811 = vmatpush1.bf16.msra.mxu1 %v3593_v43 }
 0x469   :  { %812 = vmatprep.subr.bf16.mxu1 %v3596_v44 }
 0x46c   :  { %813 = vmatpush1.bf16.msra.mxu1 %v3605_v47 }
 0x46d   :  { %2667 = vmatprep.subr.bf16.mxu1 %v4393_v10 }
 0x46f   :  { %831 = vmatmul.mubr.bf16.vlgmr.msra.gmra.mrb[12].mxu1 %v3667_v6  ;;  %v4394_v6 = vld [vmem:[#allocation17_spill] sm:$0xff] }
 0x470   :  { %2668 = vmatpush3.bf16.msra.mxu1 %v3632_v51  ;;  %2683 = vmatprep.mubr.msk.bf16.mxu1 %vm3378_vm2, %v4393_v10 }
 0x471   :  { %2669 = vmatprep.subr.bf16.mxu1 %v4393_v10 }
 0x474   :  { %2670 = vmatpush3.bf16.msra.mxu1 %v3636_v52 }
 0x475   :  { %2671 = vmatprep.subr.bf16.mxu1 %v4393_v10 }
 0x478   :  { %2672 = vmatpush3.bf16.msra.mxu1 %v3640_v53 }
 0x479   :  { %2673 = vmatprep.subr.bf16.mxu1 %v4393_v10 }
 0x47c   :  { %2674 = vmatpush3.bf16.msra.mxu1 %v3644_v54 }
 0x47d   :  { %2675 = vmatprep.subr.bf16.mxu1 %v4393_v10 }
 0x480   :  { %2676 = vmatpush3.bf16.msra.mxu1 %v3648_v55 }
 0x481   :  { %2677 = vmatprep.subr.bf16.mxu1 %v4393_v10 }
 0x484   :  { %2678 = vmatpush3.bf16.msra.mxu1 %v3652_v56 }
 0x485   :  { %2679 = vmatprep.subr.bf16.mxu1 %v4393_v10 }
 0x488   :  { %2680 = vmatpush3.bf16.msra.mxu1 %v3655_v57  ;;  %v2497_v57 = vmul.f32 -1.442695, %v876_v22 }
 0x489   :  { %2681 = vmatprep.subr.bf16.mxu1 %v4393_v10 }
 0x48c   :  { %2682 = vmatpush3.bf16.msra.mxu1 %v3659_v58  ;;  %v792_v58 = vrot.slane %v784_v14, 2 }
 0x48d   :  { %1032 = vmatprep.subr.bf16.mxu1 %v4394_v6 }
 0x48e   :  { %v874_v60 = vadd.f32 %v3698_v15, %v792_v58 }
 0x542   :  { %v832_v2 = vpop.f32.mrb[12].mxu1 }
 0x543   :  { %v833_v63 = vadd.f32 %v832_v2, %v790_v62  ;;  %v834_v5 = vpop.f32.mrb[13].mxu1 }
 0x544   :  { %v835_v8 = vadd.f32 %v834_v5, %v791_v1  ;;  %v836_v7 = vpop.f32.mrb[14].mxu1 }
 0x545   :  { %v2495_v11 = vmul.f32 -1.442695, %v833_v63  ;;  %v837_v12 = vpop.f32.mrb[15].mxu1 }
 0x546   :  { %v2496_v3 = vmul.f32 -1.442695, %v835_v8 }
 0x547   :  { %3005 = vpow2.f32 %v2495_v11 }
 0x548   :  { %3007 = vpow2.f32 %v2496_v3 }
 0x549   :  { %3009 = vpow2.f32 %v2497_v57 }
 0x54a   :  { %3011 = vtanh.f32 %v874_v60 }
 0x551   :  { %v3006_v56 = vpop.eup %3005 }
 0x552   :  { %v3008_v61 = vpop.eup %3007  ;;  %v883_v62 = vadd.f32 1.0, %v3006_v56 }
 0x553   :  { %v889_v2 = vadd.f32 1.0, %v3008_v61  ;;  %v3010_v1 = vpop.eup %3009 }
 0x554   :  { %3013 = vrcp.f32 %v883_v62  ;;  %v3012_v63 = vpop.eup %3011  ;;  %v896_v7 = vadd.f32 1.0, %v3010_v1 }
 0x555   :  { %3015 = vrcp.f32 %v889_v2 }
 0x556   :  { %3017 = vrcp.f32 %v896_v7  ;;  %v4397_v7 = vld [vmem:[#allocation21_spill] sm:$0xff] }
 0x55e   :  { %v3014_v5 = vpop.eup %3013 }
 0x55f   :  { %v3016_v8 = vpop.eup %3015  ;;  %v900_v4 = vmul.f32 %v3014_v5, %v3012_v63 }
 0x560   :  { %v899_v59 = vmul.f32 %v3016_v8, %v3664_v0  ;;  %v3018_v22 = vpop.eup %3017  ;;  %v4396_v8 = vld [vmem:[#allocation20_spill] sm:$0xff] }
 0x562   :  { %v3748_v11 = vadd.f32 %v900_v4, %v899_v59  ;;  %v4398_v4 = vld [vmem:[#allocation18_spill] sm:$0xff]  ;;  %v1017_v59 = vld [vmem:[#allocation2 + $0x8] sm:$0x30] }
 0x564   :  { %3019 = vtanh.f32 %v3748_v11 }
 0x56e   :  { %v3020_v57 = vpop.eup %3019 }
 0x56f   :  { %v903_v56 = vmul.f32 %v3020_v57, %v3018_v22  ;;  %v1016_v22 = vld [vmem:[#allocation2] sm:$0x30]  ;;  %v1025_v57 = vrot.slane %v1017_v59, 4 }
 0x571   :  { %v3751_v58 = vpack.c.bf16 %v903_v56, %v903_v56  ;;  %v1024_v56 = vrot.slane %v1016_v22, 4 }
 0x573   :  { %2684 = vmatmul.mubr.bf16.vlgmr.msra.gmra.mrb[8].mxu1 %v3751_v58 }
 0x574   :  { %1033 = vmatpush1.bf16.msra.mxu1 %v3513_v19  ;;  %1064 = vmatprep.mubr.bf16.mxu1 %v4392_v9 }
 0x575   :  { %1034 = vmatprep.subr.bf16.mxu1 %v3516_v20 }
 0x578   :  { %1035 = vmatpush1.bf16.msra.mxu1 %v3530_v23 }
 0x579   :  { %1036 = vmatprep.subr.bf16.mxu1 %v3534_v24 }
 0x57c   :  { %1037 = vmatpush1.bf16.msra.mxu1 %v3543_v27 }
 0x57d   :  { %1038 = vmatprep.subr.bf16.mxu1 %v3547_v28 }
 0x580   :  { %1039 = vmatpush1.bf16.msra.mxu1 %v3557_v31 }
 0x581   :  { %1040 = vmatprep.subr.bf16.mxu1 %v3560_v32 }
 0x584   :  { %1041 = vmatpush1.bf16.msra.mxu1 %v3569_v35 }
 0x585   :  { %1042 = vmatprep.subr.bf16.mxu1 %v3573_v37 }
 0x588   :  { %1043 = vmatpush1.bf16.msra.mxu1 %v3579_v39 }
 0x589   :  { %1044 = vmatprep.subr.bf16.mxu1 %v3582_v40 }
 0x58c   :  { %1045 = vmatpush1.bf16.msra.mxu1 %v3593_v43 }
 0x58d   :  { %1046 = vmatprep.subr.bf16.mxu1 %v3596_v44 }
 0x590   :  { %1047 = vmatpush1.bf16.msra.mxu1 %v3605_v47 }
 0x591   :  { %2715 = vmatprep.subr.bf16.mxu1 %v4393_v10 }
 0x593   :  { %1065 = vmatmul.mubr.bf16.vlgmr.msra.gmra.mrb[16].mxu1 %v3751_v58 }
 0x594   :  { %2716 = vmatpush3.bf16.msra.mxu1 %v3510_v17  ;;  %2719 = vmatprep.mubr.msk.bf16.mxu1 %vm3378_vm2, %v4393_v10 }
 0x595   :  { %2717 = vmatprep.subr.bf16.mxu1 %v4393_v10 }
 0x598   :  { %2718 = vmatpush3.bf16.msra.mxu1 %v3522_v21 }
 0x599   :  { %1266 = vmatprep.subr.bf16.mxu1 %v4394_v6 }
 0x646   :  { %v939_v19 = vpop.f32.mrb[8].mxu1 }
 0x647   :  { %v2864_v20 = vadd.f32 %v939_v19, %v3694_v16  ;;  %v2685_v23 = vpop.f32.mrb[9].mxu1 }
 0x648   :  { %v942_v24 = vpop.f32.mrb[10].mxu1 }
 0x649   :  { %3021 = vtanh.f32 %v2864_v20  ;;  %v2686_v27 = vpop.f32.mrb[11].mxu1  ;;  %v2498_v15 = vmul.f32 -1.442695, %v2864_v20 }
 0x64b   :  { %3023 = vpow2.f32 %v2498_v15 }
 0x653   :  { %v3022_v28 = vpop.eup %3021 }
 0x654   :  { %954 = vrot.lane.b32.xlu0 %v3022_v28, %s3368_s2  ;;  %v1018_v28 = vld [vmem:[#allocation2 + $0x10] sm:$0x30] }
 0x655   :  { %v3024_v21 = vpop.eup %3023 }
 0x656   :  { %v948_v6 = vadd.f32 1.0, %v3024_v21  ;;  %v1026_v21 = vrot.slane %v1018_v28, 4 }
 0x658   :  { %3025 = vrcp.f32 %v948_v6 }
 0x662   :  { %v3026_v12 = vpop.eup %3025 }
 0x663   :  { %v952_v14 = vmul.f32 %v3026_v12, %v3703_v18  ;;  %v4395_v18 = vld [vmem:[#allocation19_spill] sm:$0xff] }
 0x666   :  { %v3780_v17 = vpop.f32.mrb[16].mxu1 }
 0x667   :  { %v3782_v31 = vpop.f32.mrb[17].mxu1  ;;  %v1067_v19 = vadd.f32 %v3780_v17, %v1024_v56 }
 0x668   :  { %v1070_v32 = vpop.f32.mrb[18].mxu1 }
 0x669   :  { %v1071_v0 = vpop.f32.mrb[19].mxu1  ;;  %v2500_v23 = vmul.f32 -1.442695, %v1067_v19 }
 0x66a   :  { %v1019_v0 = vld [vmem:[#allocation2 + $0x18] sm:$0x30] }
 0x6c6   :  { %v955_v3 = vpop.permute.xlu0 %954 }
 0x6c7   :  { %v957_v13 = vmul.f32 %v3026_v12, %v955_v3 }
 0x6c9   :  { %959 = vrot.lane.b32.xlu1 %v957_v13, %s3373_s15 }
 0x73b   :  { %v960_v60 = vpop.permute.xlu1 %959 }
 0x73c   :  { %v3786_v61 = vadd.f32 %v960_v60, %v952_v14 }
 0x73e   :  { %3027 = vtanh.f32 %v3786_v61 }
 0x748   :  { %v3028_v62 = vpop.eup %3027 }
 0x749   :  { %965 = vrot.lane.b32.xlu0 %v3028_v62, %s3368_s2 }
 0x7bb   :  { %v966_v2 = vpop.permute.xlu0 %965 }
 0x7bc   :  { %v968_v1 = vmul.f32 %v3026_v12, %v966_v2  ;;  %v1027_v12 = vrot.slane %v1019_v0, 4 }
 0x7be   :  { %v969_v63 = vpack.c.bf16 %v968_v1, %v968_v1 }
 0x7c0   :  { %971 = vrot.lane.b32.xlu1 %v969_v63, %s3373_s15 }
 0x832   :  { %v972_v5 = vpop.permute.xlu1 %971 }
 0x833   :  { %2692 = vmatmul.mubr.msk.bf16.vlgmr.msra.gmra.mrb[16].mxu0 %vm308_vm3, %v972_v5 }
 0x834   :  { %1074 = vmatpush1.bf16.msra.mxu0 %v3537_v25  ;;  %1105 = vmatprep.mubr.bf16.mxu0 %v4392_v9 }
 0x835   :  { %1075 = vmatprep.subr.bf16.mxu0 %v3540_v26 }
 0x838   :  { %1076 = vmatpush1.bf16.msra.mxu0 %v3550_v29 }
 0x839   :  { %1077 = vmatprep.subr.bf16.mxu0 %v3554_v30 }
 0x83c   :  { %1078 = vmatpush1.bf16.msra.mxu0 %v3563_v33 }
 0x83d   :  { %1079 = vmatprep.subr.bf16.mxu0 %v3566_v34 }
 0x840   :  { %1080 = vmatpush1.bf16.msra.mxu0 %v3571_v36 }
 0x841   :  { %1081 = vmatprep.subr.bf16.mxu0 %v3576_v38 }
 0x844   :  { %1082 = vmatpush1.bf16.msra.mxu0 %v3585_v41 }
 0x845   :  { %1083 = vmatprep.subr.bf16.mxu0 %v3590_v42 }
 0x848   :  { %1084 = vmatpush1.bf16.msra.mxu0 %v3599_v45 }
 0x849   :  { %1085 = vmatprep.subr.bf16.mxu0 %v3602_v46 }
 0x84c   :  { %1086 = vmatpush1.bf16.msra.mxu0 %v3609_v48 }
 0x84d   :  { %1087 = vmatprep.subr.bf16.mxu0 %v3612_v49 }
 0x850   :  { %1088 = vmatpush1.bf16.msra.mxu0 %v3617_v50 }
 0x851   :  { %2695 = vmatprep.subr.bf16.mxu0 %v4393_v10 }
 0x853   :  { %1106 = vmatmul.mubr.bf16.vlgmr.msra.gmra.mrb[20].mxu0 %v3751_v58  ;;  %v1069_v58 = vadd.f32 %v3782_v31, %v1025_v57 }
 0x854   :  { %2696 = vmatpush3.bf16.msra.mxu0 %v3632_v51  ;;  %2711 = vmatprep.mubr.msk.bf16.mxu0 %vm3378_vm2, %v4393_v10 }
 0x855   :  { %2697 = vmatprep.subr.bf16.mxu0 %v4393_v10  ;;  %v2501_v20 = vmul.f32 -1.442695, %v1069_v58 }
 0x857   :  { %3029 = vpow2.f32 %v2501_v20 }
 0x858   :  { %2698 = vmatpush3.bf16.msra.mxu0 %v3636_v52  ;;  %3031 = vpow2.f32 %v2500_v23 }
 0x859   :  { %2699 = vmatprep.subr.bf16.mxu0 %v4393_v10 }
 0x85c   :  { %2700 = vmatpush3.bf16.msra.mxu0 %v3640_v53 }
 0x85d   :  { %2701 = vmatprep.subr.bf16.mxu0 %v4393_v10 }
 0x860   :  { %2702 = vmatpush3.bf16.msra.mxu0 %v3644_v54 }
 0x861   :  { %2703 = vmatprep.subr.bf16.mxu0 %v4393_v10  ;;  %v3030_v24 = vpop.eup %3029 }
 0x862   :  { %v3032_v27 = vpop.eup %3031  ;;  %v1123_v32 = vadd.f32 1.0, %v3030_v24 }
 0x863   :  { %v1117_v15 = vadd.f32 1.0, %v3032_v27 }
 0x864   :  { %2704 = vmatpush3.bf16.msra.mxu0 %v3648_v55  ;;  %3033 = vrcp.f32 %v1123_v32 }
 0x865   :  { %2705 = vmatprep.subr.bf16.mxu0 %v4393_v10  ;;  %3035 = vrcp.f32 %v1117_v15 }
 0x868   :  { %2706 = vmatpush3.bf16.msra.mxu0 %v4395_v18 }
 0x869   :  { %2707 = vmatprep.subr.bf16.mxu0 %v4393_v10 }
 0x86c   :  { %2708 = vmatpush3.bf16.msra.mxu0 %v4396_v8 }
 0x86d   :  { %2709 = vmatprep.subr.bf16.mxu0 %v4393_v10 }
 0x86e   :  { %v3034_v62 = vpop.eup %3033 }
 0x86f   :  { %v3036_v2 = vpop.eup %3035  ;;  %v1133_v63 = vmul.f32 %v3034_v62, %v3748_v11 }
 0x870   :  { %2710 = vmatpush3.bf16.msra.mxu0 %v4397_v7 }
 0x871   :  { %1307 = vmatprep.subr.bf16.mxu0 %v4398_v4 }
 0x926   :  { %v1107_v6 = vpop.f32.mrb[20].mxu0 }
 0x927   :  { %v1108_v3 = vadd.f32 %v1107_v6, %v1026_v21  ;;  %v1109_v13 = vpop.f32.mrb[21].mxu0 }
 0x928   :  { %v1110_v31 = vadd.f32 %v1109_v13, %v1027_v12  ;;  %v1111_v14 = vpop.f32.mrb[22].mxu0  ;;  %v3885_v12 = vld [vmem:[#allocation6] ss:$16 sps:$4 sm:$0xff]   ;;  %v3895_v13 = vld [vmem:[#allocation6 + $0x44] ss:$16 sps:$4 sm:$0xff]  }
 0x929   :  { %3037 = vtanh.f32 %v1108_v3  ;;  %v1112_v17 = vpop.f32.mrb[23].mxu0  ;;  %v3892_v3 = vld [vmem:[#allocation6 + $0x20] ss:$16 sps:$4 sm:$0xff]   ;;  %v3901_v14 = vld [vmem:[#allocation6 + $0x64] ss:$16 sps:$4 sm:$0xff]  }
 0x92a   :  { %v2502_v60 = vmul.f32 -1.442695, %v1110_v31  ;;  %v3898_v31 = vld [vmem:[#allocation6 + $0x40] ss:$16 sps:$4 sm:$0xff]  }
 0x92b   :  { %v3904_v17 = vld [vmem:[#allocation6 + $0x60] ss:$16 sps:$4 sm:$0xff]  }
 0x92c   :  { %3039 = vpow2.f32 %v2502_v60  ;;  %v3907_v60 = vld [vmem:[#allocation6 + $0x84] ss:$16 sps:$4 sm:$0xff]  }
 0x933   :  { %v3038_v1 = vpop.eup %3037 }
 0x934   :  { %v1134_v5 = vmul.f32 %v3038_v1, %v3036_v2 }
 0x936   :  { %v3040_v59 = vpop.eup %3039  ;;  %v3831_v22 = vadd.f32 %v1134_v5, %v1133_v63 }
 0x937   :  { %v1130_v57 = vadd.f32 1.0, %v3040_v59 }
 0x938   :  { %3041 = vtanh.f32 %v3831_v22 }
 0x939   :  { %3043 = vrcp.f32 %v1130_v57 }
 0x942   :  { %v3042_v56 = vpop.eup %3041 }
 0x943   :  { %v3044_v58 = vpop.eup %3043 }
 0x944   :  { %v1137_v19 = vmul.f32 %v3044_v58, %v3042_v56 }
 0x946   :  { %v3834_v20 = vpack.c.bf16 %v1137_v19, %v1137_v19 }
 0x948   :  { %2712 = vmatmul.mubr.bf16.vlgmr.msra.gmra.mrb[16].mxu0 %v3834_v20 }
 0x949   :  { %1308 = vmatpush1.bf16.msra.mxu0 %v3537_v25  ;;  %1339 = vmatprep.mubr.bf16.mxu0 %v4392_v9  ;;  %v3858_v25 = vld [vmem:[%s4359_s5] sm:$0xff]  }
 0x94a   :  { %1309 = vmatprep.subr.bf16.mxu0 %v3540_v26  ;;  %v3867_v26 = vld [vmem:[%s4359_s5 + $0x8] sm:$0xff]  }
 0x94d   :  { %1310 = vmatpush1.bf16.msra.mxu0 %v3550_v29 }
 0x94e   :  { %1311 = vmatprep.subr.bf16.mxu0 %v3554_v30 }
 0x951   :  { %1312 = vmatpush1.bf16.msra.mxu0 %v3563_v33 }
 0x952   :  { %1313 = vmatprep.subr.bf16.mxu0 %v3566_v34 }
 0x955   :  { %1314 = vmatpush1.bf16.msra.mxu0 %v3571_v36 }
 0x956   :  { %1315 = vmatprep.subr.bf16.mxu0 %v3576_v38 }
 0x959   :  { %1316 = vmatpush1.bf16.msra.mxu0 %v3585_v41 }
 0x95a   :  { %1317 = vmatprep.subr.bf16.mxu0 %v3590_v42 }
 0x95d   :  { %1318 = vmatpush1.bf16.msra.mxu0 %v3599_v45 }
 0x95e   :  { %1319 = vmatprep.subr.bf16.mxu0 %v3602_v46 }
 0x961   :  { %1320 = vmatpush1.bf16.msra.mxu0 %v3609_v48 }
 0x962   :  { %1321 = vmatprep.subr.bf16.mxu0 %v3612_v49 }
 0x965   :  { %1322 = vmatpush1.bf16.msra.mxu0 %v3617_v50 }
 0x966   :  { %2743 = vmatprep.subr.bf16.mxu0 %v4393_v10 }
 0x968   :  { %1340 = vmatmul.mubr.bf16.vlgmr.msra.gmra.mrb[24].mxu0 %v3834_v20 }
 0x969   :  { %2744 = vmatpush3.bf16.msra.mxu0 %v3858_v25  ;;  %2747 = vmatprep.mubr.msk.bf16.mxu0 %vm3378_vm2, %v4393_v10 }
 0x96a   :  { %2745 = vmatprep.subr.bf16.mxu0 %v4393_v10 }
 0x96d   :  { %2746 = vmatpush3.bf16.msra.mxu0 %v3867_v26 }
 0x96e   :  { %1529 = vmatprep.subr.bf16.mxu0 %v4398_v4 }
 0xa1b   :  { %v1173_v29 = vpop.f32.mrb[16].mxu0 }
 0xa1c   :  { %v2865_v30 = vadd.f32 %v1173_v29, %v3694_v16  ;;  %v2713_v33 = vpop.f32.mrb[17].mxu0 }
 0xa1d   :  { %v1176_v34 = vpop.f32.mrb[18].mxu0 }
 0xa1e   :  { %3045 = vtanh.f32 %v2865_v30  ;;  %v2714_v36 = vpop.f32.mrb[19].mxu0  ;;  %v2503_v48 = vmul.f32 -1.442695, %v2865_v30 }
 0xa20   :  { %3047 = vpow2.f32 %v2503_v48  ;;  %v3960_v48 = vld [vmem:[#allocation6 + $0xa4] ss:$16 sps:$4 sm:$0xff]  }
 0xa28   :  { %v3046_v38 = vpop.eup %3045 }
 0xa29   :  { %1188 = vrot.lane.b32.xlu0 %v3046_v38, %s3368_s2 }
 0xa2a   :  { %v3048_v49 = vpop.eup %3047 }
 0xa2b   :  { %v1182_v50 = vadd.f32 1.0, %v3048_v49  ;;  %v3963_v49 = vld [vmem:[#allocation6 + $0xa0] ss:$16 sps:$4 sm:$0xff]  }
 0xa2d   :  { %3049 = vrcp.f32 %v1182_v50  ;;  %v3966_v50 = vld [vmem:[#allocation6 + $0xc4] ss:$16 sps:$4 sm:$0xff]  }
 0xa37   :  { %v3050_v11 = vpop.eup %3049 }
 0xa38   :  { %v1186_v24 = vmul.f32 %v3050_v11, %v3786_v61  ;;  %v3889_v61 = vld [vmem:[#allocation6 + $0x24] ss:$16 sps:$4 sm:$0xff]  }
 0xa3b   :  { %v3873_v41 = vpop.f32.mrb[24].mxu0 }
 0xa3c   :  { %v3875_v42 = vpop.f32.mrb[25].mxu0 }
 0xa3d   :  { %v1345_v45 = vpop.f32.mrb[26].mxu0 }
 0xa3e   :  { %v1346_v46 = vpop.f32.mrb[27].mxu0 }
 0xa9b   :  { %v1189_v4 = vpop.permute.xlu0 %1188 }
 0xa9c   :  { %v1191_v23 = vmul.f32 %v3050_v11, %v1189_v4  ;;  %v3972_v4 = vld [vmem:[#allocation6 + $0xe4] ss:$16 sps:$4 sm:$0xff]  }
 0xa9e   :  { %1193 = vrot.lane.b32.xlu1 %v1191_v23, %s3373_s15  ;;  %v3975_v23 = vld [vmem:[#allocation6 + $0xe0] ss:$16 sps:$4 sm:$0xff]  }
 0xb10   :  { %v1194_v27 = vpop.permute.xlu1 %1193 }
 0xb11   :  { %v3879_v28 = vadd.f32 %v1194_v27, %v1186_v24 }
 0xb13   :  { %3051 = vtanh.f32 %v3879_v28 }
 0xb1d   :  { %v3052_v32 = vpop.eup %3051 }
 0xb1e   :  { %1199 = vrot.lane.b32.xlu0 %v3052_v32, %s3368_s2 }
 0xb90   :  { %v1200_v0 = vpop.permute.xlu0 %1199 }
 0xb91   :  { %v1202_v15 = vmul.f32 %v3050_v11, %v1200_v0  ;;  %v3969_v11 = vld [vmem:[#allocation6 + $0xc0] ss:$16 sps:$4 sm:$0xff]  }
 0xb93   :  { %v1203_v21 = vpack.c.bf16 %v1202_v15, %v1202_v15 }
 0xb95   :  { %1205 = vrot.lane.b32.xlu1 %v1203_v21, %s3373_s15 }
 0xc07   :  { %v1206_v6 = vpop.permute.xlu1 %1205 }
 0xc08   :  { %2720 = vmatmul.mubr.msk.bf16.vlgmr.msra.gmra.mrb[20].mxu1 %vm308_vm3, %v1206_v6 }
 0xc09   :  { %1267 = vmatpush1.bf16.msra.mxu1 %v3885_v12  ;;  %1298 = vmatprep.mubr.bf16.mxu1 %v4392_v9 }
 0xc0a   :  { %1268 = vmatprep.subr.bf16.mxu1 %v3889_v61 }
 0xc0d   :  { %1269 = vmatpush1.bf16.msra.mxu1 %v3892_v3 }
 0xc0e   :  { %1270 = vmatprep.subr.bf16.mxu1 %v3895_v13 }
 0xc11   :  { %1271 = vmatpush1.bf16.msra.mxu1 %v3898_v31 }
 0xc12   :  { %1272 = vmatprep.subr.bf16.mxu1 %v3901_v14 }
 0xc15   :  { %1273 = vmatpush1.bf16.msra.mxu1 %v3904_v17 }
 0xc16   :  { %1274 = vmatprep.subr.bf16.mxu1 %v3907_v60 }
 0xc19   :  { %1275 = vmatpush1.bf16.msra.mxu1 %v3569_v35  ;;  %v3936_v35 = vld [vmem:[#allocation6 + $0x4] ss:$16 sps:$4 sm:$0xff]  }
 0xc1a   :  { %1276 = vmatprep.subr.bf16.mxu1 %v3573_v37  ;;  %4399 = vst [vmem:[#allocation17_spill] sm:$0xff] %v3936_v35  ;;  %v1250_v37 = vld [vmem:[#allocation2] sm:$0xc0] }
 0xc1d   :  { %1277 = vmatpush1.bf16.msra.mxu1 %v3579_v39  ;;  %v1251_v39 = vld [vmem:[#allocation2 + $0x8] sm:$0xc0] }
 0xc1e   :  { %1278 = vmatprep.subr.bf16.mxu1 %v3582_v40  ;;  %v1258_v40 = vrot.slane %v1250_v37, 6 }
 0xc21   :  { %1279 = vmatpush1.bf16.msra.mxu1 %v3593_v43 }
 0xc22   :  { %1280 = vmatprep.subr.bf16.mxu1 %v3596_v44  ;;  %v1259_v44 = vrot.slane %v1251_v39, 6 }
 0xc25   :  { %1281 = vmatpush1.bf16.msra.mxu1 %v3605_v47 }
 0xc26   :  { %2723 = vmatprep.subr.bf16.mxu1 %v4393_v10 }
 0xc28   :  { %1299 = vmatmul.mubr.bf16.vlgmr.msra.gmra.mrb[24].mxu1 %v3834_v20 }
 0xc29   :  { %2724 = vmatpush3.bf16.msra.mxu1 %v3632_v51  ;;  %2739 = vmatprep.mubr.msk.bf16.mxu1 %vm3378_vm2, %v4393_v10 }
 0xc2a   :  { %2725 = vmatprep.subr.bf16.mxu1 %v4393_v10 }
 0xc2d   :  { %2726 = vmatpush3.bf16.msra.mxu1 %v3636_v52 }
 0xc2e   :  { %2727 = vmatprep.subr.bf16.mxu1 %v4393_v10 }
 0xc31   :  { %2728 = vmatpush3.bf16.msra.mxu1 %v3640_v53 }
 0xc32   :  { %2729 = vmatprep.subr.bf16.mxu1 %v4393_v10 }
 0xc35   :  { %2730 = vmatpush3.bf16.msra.mxu1 %v3644_v54  ;;  %v1253_v54 = vld [vmem:[#allocation2 + $0x18] sm:$0xc0] }
 0xc36   :  { %2731 = vmatprep.subr.bf16.mxu1 %v4393_v10  ;;  %v1261_v62 = vrot.slane %v1253_v54, 6 }
 0xc38   :  { %v1344_v2 = vadd.f32 %v3875_v42, %v1261_v62 }
 0xc39   :  { %2732 = vmatpush3.bf16.msra.mxu1 %v3648_v55 }
 0xc3a   :  { %2733 = vmatprep.subr.bf16.mxu1 %v4393_v10  ;;  %v2507_v63 = vmul.f32 -1.442695, %v1344_v2 }
 0xc3d   :  { %2734 = vmatpush3.bf16.msra.mxu1 %v4395_v18 }
 0xc3e   :  { %2735 = vmatprep.subr.bf16.mxu1 %v4393_v10 }
 0xc41   :  { %2736 = vmatpush3.bf16.msra.mxu1 %v4396_v8 }
 0xc42   :  { %2737 = vmatprep.subr.bf16.mxu1 %v4393_v10 }
 0xc45   :  { %2738 = vmatpush3.bf16.msra.mxu1 %v4397_v7  ;;  %v1252_v7 = vld [vmem:[#allocation2 + $0x10] sm:$0xc0] }
 0xc46   :  { %1488 = vmatprep.subr.bf16.mxu1 %v3936_v35  ;;  %v1260_v1 = vrot.slane %v1252_v7, 6 }
 0xc48   :  { %v1342_v5 = vadd.f32 %v3873_v41, %v1260_v1  ;;  %v4000_v1 = vld [vmem:[#allocation6 + $0x8] ss:$16 sps:$4 sm:$0xff]  }
 0xcfb   :  { %v1300_v43 = vpop.f32.mrb[24].mxu1 }
 0xcfc   :  { %v1301_v47 = vadd.f32 %v1300_v43, %v1258_v40  ;;  %v1302_v51 = vpop.f32.mrb[25].mxu1 }
 0xcfd   :  { %v1303_v52 = vadd.f32 %v1302_v51, %v1259_v44  ;;  %v1304_v53 = vpop.f32.mrb[26].mxu1 }
 0xcfe   :  { %v2505_v55 = vmul.f32 -1.442695, %v1301_v47  ;;  %v1305_v18 = vpop.f32.mrb[27].mxu1 }
 0xcff   :  { %v2506_v8 = vmul.f32 -1.442695, %v1303_v52 }
 0xd00   :  { %3053 = vpow2.f32 %v2505_v55 }
 0xd01   :  { %3055 = vpow2.f32 %v2506_v8 }
 0xd02   :  { %3057 = vpow2.f32 %v2507_v63  ;;  %v4007_v63 = vld [vmem:[#allocation6 + $0x28] ss:$16 sps:$4 sm:$0xff]  }
 0xd03   :  { %3059 = vtanh.f32 %v1342_v5  ;;  %v4010_v5 = vld [vmem:[#allocation6 + $0x4c] ss:$16 sps:$4 sm:$0xff]  }
 0xd0a   :  { %v3054_v59 = vpop.eup %3053 }
 0xd0b   :  { %v3056_v57 = vpop.eup %3055  ;;  %v1351_v56 = vadd.f32 1.0, %v3054_v59  ;;  %v4013_v59 = vld [vmem:[#allocation6 + $0x48] ss:$16 sps:$4 sm:$0xff]  }
 0xd0c   :  { %v1357_v58 = vadd.f32 1.0, %v3056_v57  ;;  %v3058_v19 = vpop.eup %3057  ;;  %v4016_v57 = vld [vmem:[#allocation6 + $0x6c] ss:$16 sps:$4 sm:$0xff]  }
 0xd0d   :  { %3061 = vrcp.f32 %v1351_v56  ;;  %v3060_v20 = vpop.eup %3059  ;;  %v1364_v33 = vadd.f32 1.0, %v3058_v19  ;;  %v4019_v56 = vld [vmem:[#allocation6 + $0x68] ss:$16 sps:$4 sm:$0xff]  }
 0xd0e   :  { %3063 = vrcp.f32 %v1357_v58  ;;  %v4022_v58 = vld [vmem:[#allocation6 + $0x8c] ss:$16 sps:$4 sm:$0xff]   ;;  %v4025_v19 = vld [vmem:[#allocation6 + $0x88] ss:$16 sps:$4 sm:$0xff]  }
 0xd0f   :  { %3065 = vrcp.f32 %v1364_v33  ;;  %v4037_v33 = vld [vmem:[#allocation6 + $0xc8] ss:$16 sps:$4 sm:$0xff]  }
 0xd17   :  { %v3062_v29 = vpop.eup %3061 }
 0xd18   :  { %v3064_v30 = vpop.eup %3063  ;;  %v1368_v34 = vmul.f32 %v3062_v29, %v3060_v20  ;;  %v4028_v20 = vld [vmem:[#allocation6 + $0xac] ss:$16 sps:$4 sm:$0xff]   ;;  %v4031_v29 = vld [vmem:[#allocation6 + $0xa8] ss:$16 sps:$4 sm:$0xff]  }
 0xd19   :  { %v1367_v36 = vmul.f32 %v3064_v30, %v3831_v22  ;;  %v3066_v41 = vpop.eup %3065  ;;  %v3957_v22 = vld [vmem:[#allocation6 + $0x80] ss:$16 sps:$4 sm:$0xff]   ;;  %v4034_v30 = vld [vmem:[#allocation6 + $0xcc] ss:$16 sps:$4 sm:$0xff]  }
 0xd1b   :  { %v3942_v38 = vadd.f32 %v1368_v34, %v1367_v36  ;;  %v4040_v34 = vld [vmem:[#allocation6 + $0xec] ss:$16 sps:$4 sm:$0xff]   ;;  %v4043_v36 = vld [vmem:[#allocation6 + $0xe8] ss:$16 sps:$4 sm:$0xff]  }
 0xd1d   :  { %3067 = vtanh.f32 %v3942_v38 }
 0xd27   :  { %v3068_v42 = vpop.eup %3067 }
 0xd28   :  { %v1371_v45 = vmul.f32 %v3068_v42, %v3066_v41  ;;  %v4048_v41 = vld [vmem:[#allocation9] sm:$0xff]   ;;  %v4054_v42 = vld [vmem:[#allocation9 + $0x8] sm:$0xff]  }
 0xd2a   :  { %v3945_v46 = vpack.c.bf16 %v1371_v45, %v1371_v45  ;;  %v4058_v45 = vld [vmem:[#allocation9 + $0x10] sm:$0xff]  }
 0xd2c   :  { %2740 = vmatmul.mubr.bf16.vlgmr.msra.gmra.mrb[20].mxu1 %v3945_v46 }
 0xd2d   :  { %1489 = vmatpush1.bf16.msra.mxu1 %v3885_v12  ;;  %1520 = vmatprep.mubr.bf16.mxu1 %v4392_v9 }
 0xd2e   :  { %1490 = vmatprep.subr.bf16.mxu1 %v3889_v61 }
 0xd31   :  { %1491 = vmatpush1.bf16.msra.mxu1 %v3892_v3 }
 0xd32   :  { %1492 = vmatprep.subr.bf16.mxu1 %v3895_v13 }
 0xd35   :  { %1493 = vmatpush1.bf16.msra.mxu1 %v3898_v31 }
 0xd36   :  { %1494 = vmatprep.subr.bf16.mxu1 %v3901_v14 }
 0xd39   :  { %1495 = vmatpush1.bf16.msra.mxu1 %v3904_v17 }
 0xd3a   :  { %1496 = vmatprep.subr.bf16.mxu1 %v3907_v60 }
 0xd3d   :  { %1497 = vmatpush1.bf16.msra.mxu1 %v3957_v22 }
 0xd3e   :  { %1498 = vmatprep.subr.bf16.mxu1 %v3960_v48 }
 0xd41   :  { %1499 = vmatpush1.bf16.msra.mxu1 %v3963_v49 }
 0xd42   :  { %1500 = vmatprep.subr.bf16.mxu1 %v3966_v50 }
 0xd45   :  { %1501 = vmatpush1.bf16.msra.mxu1 %v3969_v11 }
 0xd46   :  { %1502 = vmatprep.subr.bf16.mxu1 %v3972_v4 }
 0xd49   :  { %1503 = vmatpush1.bf16.msra.mxu1 %v3975_v23 }
 0xd4a   :  { %2771 = vmatprep.subr.bf16.mxu1 %v4393_v10 }
 0xd4c   :  { %1521 = vmatmul.mubr.bf16.vlgmr.msra.gmra.mrb[28].mxu1 %v3945_v46 }
 0xd4d   :  { %2772 = vmatpush3.bf16.msra.mxu1 %v3858_v25  ;;  %2775 = vmatprep.mubr.msk.bf16.mxu1 %vm3378_vm2, %v4393_v10 }
 0xd4e   :  { %2773 = vmatprep.subr.bf16.mxu1 %v4393_v10 }
 0xd51   :  { %2774 = vmatpush3.bf16.msra.mxu1 %v3867_v26 }
 0xd52   :  { %1722 = vmatprep.subr.bf16.mxu1 %v3936_v35 }
 0xdff   :  { %v1407_v24 = vpop.f32.mrb[20].mxu1 }
 0xe00   :  { %v2866_v27 = vadd.f32 %v1407_v24, %v3694_v16  ;;  %v2741_v32 = vpop.f32.mrb[21].mxu1  ;;  %v4066_v24 = vld [vmem:[#allocation9 + $0x20] sm:$0xff]  }
 0xe01   :  { %v1410_v0 = vpop.f32.mrb[22].mxu1  ;;  %v4074_v32 = vld [vmem:[#allocation9 + $0x30] sm:$0xff]  }
 0xe02   :  { %3069 = vtanh.f32 %v2866_v27  ;;  %v2742_v15 = vpop.f32.mrb[23].mxu1  ;;  %v2508_v43 = vmul.f32 -1.442695, %v2866_v27  ;;  %v4070_v27 = vld [vmem:[#allocation9 + $0x28] sm:$0xff]   ;;  %4401 = vst [vmem:[#allocation20_spill] sm:$0xff] %v4074_v32  ;;  %v4078_v0 = vld [vmem:[#allocation9 + $0x38] sm:$0xff]  }
 0xe03   :  { %4400 = vst [vmem:[#allocation19_spill] sm:$0xff] %v4070_v27  ;;  %4402 = vst [vmem:[#allocation21_spill] sm:$0xff] %v4078_v0  ;;  %v4081_v15 = vld [vmem:[#allocation6 + $0xc] ss:$16 sps:$4 sm:$0xff]  }
 0xe04   :  { %3071 = vpow2.f32 %v2508_v43  ;;  %4403 = vst [vmem:[#allocation18_spill] sm:$0xff] %v4081_v15 }
 0xe0c   :  { %v3070_v21 = vpop.eup %3069 }
 0xe0d   :  { %1422 = vrot.lane.b32.xlu0 %v3070_v21, %s3368_s2  ;;  %v1485_v21 = vld [vmem:[#allocation2 + $0x28] sm:$0x3] }
 0xe0e   :  { %v3072_v44 = vpop.eup %3071 }
 0xe0f   :  { %v1416_v47 = vadd.f32 1.0, %v3072_v44 }
 0xe11   :  { %3073 = vrcp.f32 %v1416_v47 }
 0xe1b   :  { %v3074_v51 = vpop.eup %3073 }
 0xe1c   :  { %v1420_v53 = vmul.f32 %v3074_v51, %v3879_v28  ;;  %v4004_v28 = vld [vmem:[#allocation6 + $0x2c] ss:$16 sps:$4 sm:$0xff]  }
 0xe1f   :  { %v3988_v6 = vpop.f32.mrb[28].mxu1 }
 0xe20   :  { %v3990_v37 = vpop.f32.mrb[29].mxu1 }
 0xe21   :  { %v1526_v39 = vpop.f32.mrb[30].mxu1 }
 0xe22   :  { %v1527_v40 = vpop.f32.mrb[31].mxu1  ;;  %v1484_v39 = vld [vmem:[#allocation2 + $0x20] sm:$0x3] }
 0xe23   :  { %v1525_v40 = vadd.f32 %v3990_v37, %v1485_v21  ;;  %v1523_v43 = vadd.f32 %v3988_v6, %v1484_v39 }
 0xe25   :  { %v2511_v44 = vmul.f32 -1.442695, %v1525_v40  ;;  %v2510_v47 = vmul.f32 -1.442695, %v1523_v43 }
 0xe7f   :  { %v1423_v16 = vpop.permute.xlu0 %1422 }
 0xe80   :  { %v1425_v52 = vmul.f32 %v3074_v51, %v1423_v16 }
 0xe82   :  { %1427 = vrot.lane.b32.xlu1 %v1425_v52, %s3373_s15 }
 0xef4   :  { %v1428_v54 = vpop.permute.xlu1 %1427 }
 0xef5   :  { %v3994_v55 = vadd.f32 %v1428_v54, %v1420_v53  ;;  %v1486_v54 = vld [vmem:[#allocation2 + $0x30] sm:$0x3] }
 0xef7   :  { %3075 = vtanh.f32 %v3994_v55 }
 0xef8   :  { %3077 = vpow2.f32 %v2511_v44 }
 0xef9   :  { %3079 = vpow2.f32 %v2510_v47 }
 0xf01   :  { %v3076_v18 = vpop.eup %3075 }
 0xf02   :  { %1433 = vrot.lane.b32.xlu0 %v3076_v18, %s3368_s2 }
 0xf74   :  { %v1434_v8 = vpop.permute.xlu0 %1433 }
 0xf75   :  { %v1436_v62 = vmul.f32 %v3074_v51, %v1434_v8  ;;  %v3078_v51 = vpop.eup %3077 }
 0xf76   :  { %v3080_v16 = vpop.eup %3079  ;;  %v1579_v52 = vadd.f32 1.0, %v3078_v51 }
 0xf77   :  { %v1437_v7 = vpack.c.bf16 %v1436_v62, %v1436_v62  ;;  %v1573_v53 = vadd.f32 1.0, %v3080_v16  ;;  %v1487_v62 = vld [vmem:[#allocation2 + $0x38] sm:$0x3] }
 0xf78   :  { %3081 = vrcp.f32 %v1579_v52 }
 0xf79   :  { %1439 = vrot.lane.b32.xlu1 %v1437_v7, %s3373_s15  ;;  %3083 = vrcp.f32 %v1573_v53 }
 0xf82   :  { %v3082_v21 = vpop.eup %3081 }
 0xf83   :  { %v3084_v39 = vpop.eup %3083  ;;  %v1589_v43 = vmul.f32 %v3082_v21, %v3942_v38 }
 0xfeb   :  { %v1440_v2 = vpop.permute.xlu1 %1439 }
 0xfec   :  { %2748 = vmatmul.mubr.msk.bf16.vlgmr.msra.gmra.mrb[28].mxu0 %vm308_vm3, %v1440_v2 }
 0xfed   :  { %1530 = vmatpush1.bf16.msra.mxu0 %v4000_v1  ;;  %1561 = vmatprep.mubr.bf16.mxu0 %v4392_v9 }
 0xfee   :  { %1531 = vmatprep.subr.bf16.mxu0 %v4004_v28 }
 0xff1   :  { %1532 = vmatpush1.bf16.msra.mxu0 %v4007_v63 }
 0xff2   :  { %1533 = vmatprep.subr.bf16.mxu0 %v4010_v5 }
 0xff5   :  { %1534 = vmatpush1.bf16.msra.mxu0 %v4013_v59 }
 0xff6   :  { %1535 = vmatprep.subr.bf16.mxu0 %v4016_v57 }
 0xff9   :  { %1536 = vmatpush1.bf16.msra.mxu0 %v4019_v56 }
 0xffa   :  { %1537 = vmatprep.subr.bf16.mxu0 %v4022_v58 }
 0xffd   :  { %1538 = vmatpush1.bf16.msra.mxu0 %v4025_v19 }
 0xffe   :  { %1539 = vmatprep.subr.bf16.mxu0 %v4028_v20 }
0x1001   :  { %1540 = vmatpush1.bf16.msra.mxu0 %v4031_v29 }
0x1002   :  { %1541 = vmatprep.subr.bf16.mxu0 %v4034_v30 }
0x1005   :  { %1542 = vmatpush1.bf16.msra.mxu0 %v4037_v33 }
0x1006   :  { %1543 = vmatprep.subr.bf16.mxu0 %v4040_v34 }
0x1009   :  { %1544 = vmatpush1.bf16.msra.mxu0 %v4043_v36 }
0x100a   :  { %2751 = vmatprep.subr.bf16.mxu0 %v4393_v10 }
0x100c   :  { %1562 = vmatmul.mubr.bf16.vlgmr.msra.gmra.mrb[32].mxu0 %v3945_v46  ;;  %v4062_v46 = vld [vmem:[#allocation9 + $0x18] sm:$0xff]  }
0x100d   :  { %2752 = vmatpush3.bf16.msra.mxu0 %v4048_v41  ;;  %2767 = vmatprep.mubr.msk.bf16.mxu0 %vm3378_vm2, %v4393_v10 }
0x100e   :  { %2753 = vmatprep.subr.bf16.mxu0 %v4393_v10 }
0x1011   :  { %2754 = vmatpush3.bf16.msra.mxu0 %v4054_v42 }
0x1012   :  { %2755 = vmatprep.subr.bf16.mxu0 %v4393_v10 }
0x1015   :  { %2756 = vmatpush3.bf16.msra.mxu0 %v4058_v45 }
0x1016   :  { %2757 = vmatprep.subr.bf16.mxu0 %v4393_v10 }
0x1019   :  { %2758 = vmatpush3.bf16.msra.mxu0 %v4062_v46 }
0x101a   :  { %2759 = vmatprep.subr.bf16.mxu0 %v4393_v10 }
0x101d   :  { %2760 = vmatpush3.bf16.msra.mxu0 %v4066_v24 }
0x101e   :  { %2761 = vmatprep.subr.bf16.mxu0 %v4393_v10 }
0x1021   :  { %2762 = vmatpush3.bf16.msra.mxu0 %v4070_v27 }
0x1022   :  { %2763 = vmatprep.subr.bf16.mxu0 %v4393_v10 }
0x1025   :  { %2764 = vmatpush3.bf16.msra.mxu0 %v4074_v32 }
0x1026   :  { %2765 = vmatprep.subr.bf16.mxu0 %v4393_v10 }
0x1029   :  { %2766 = vmatpush3.bf16.msra.mxu0 %v4078_v0 }
0x102a   :  { %1763 = vmatprep.subr.bf16.mxu0 %v4081_v15 }
0x10df   :  { %v1563_v18 = vpop.f32.mrb[32].mxu0 }
0x10e0   :  { %v1564_v8 = vadd.f32 %v1563_v18, %v1486_v54  ;;  %v1565_v7 = vpop.f32.mrb[33].mxu0  ;;  %v4117_v18 = vld [vmem:[#allocation11] sm:$0x3] }
0x10e1   :  { %v1566_v2 = vadd.f32 %v1565_v7, %v1487_v62  ;;  %v1567_v35 = vpop.f32.mrb[34].mxu0 }
0x10e2   :  { %3085 = vtanh.f32 %v1564_v8  ;;  %v1568_v37 = vpop.f32.mrb[35].mxu0 }
0x10e3   :  { %v2512_v6 = vmul.f32 -1.442695, %v1566_v2 }
0x10e5   :  { %3087 = vpow2.f32 %v2512_v6 }
0x10ec   :  { %v3086_v40 = vpop.eup %3085 }
0x10ed   :  { %v1590_v44 = vmul.f32 %v3086_v40, %v3084_v39 }
0x10ef   :  { %v3088_v47 = vpop.eup %3087  ;;  %v4087_v51 = vadd.f32 %v1590_v44, %v1589_v43 }
0x10f0   :  { %v1586_v16 = vadd.f32 1.0, %v3088_v47 }
0x10f1   :  { %3089 = vtanh.f32 %v4087_v51 }
0x10f2   :  { %3091 = vrcp.f32 %v1586_v16 }
0x10fb   :  { %v3090_v52 = vpop.eup %3089 }
0x10fc   :  { %v3092_v53 = vpop.eup %3091 }
0x10fd   :  { %v1593_v35 = vmul.f32 %v3092_v53, %v3090_v52 }
0x10ff   :  { %v4090_v54 = vpack.c.bf16 %v1593_v35, %v1593_v35 }
0x1101   :  { %2768 = vmatmul.mubr.bf16.vlgmr.msra.gmra.mrb[28].mxu0 %v4090_v54 }
0x1102   :  { %1764 = vmatpush1.bf16.msra.mxu0 %v4000_v1  ;;  %1795 = vmatprep.mubr.bf16.mxu0 %v4392_v9 }
0x1103   :  { %1765 = vmatprep.subr.bf16.mxu0 %v4004_v28 }
0x1106   :  { %1766 = vmatpush1.bf16.msra.mxu0 %v4007_v63 }
0x1107   :  { %1767 = vmatprep.subr.bf16.mxu0 %v4010_v5 }
0x110a   :  { %1768 = vmatpush1.bf16.msra.mxu0 %v4013_v59 }
0x110b   :  { %1769 = vmatprep.subr.bf16.mxu0 %v4016_v57 }
0x110e   :  { %1770 = vmatpush1.bf16.msra.mxu0 %v4019_v56 }
0x110f   :  { %1771 = vmatprep.subr.bf16.mxu0 %v4022_v58 }
0x1112   :  { %1772 = vmatpush1.bf16.msra.mxu0 %v4025_v19 }
0x1113   :  { %1773 = vmatprep.subr.bf16.mxu0 %v4028_v20 }
0x1116   :  { %1774 = vmatpush1.bf16.msra.mxu0 %v4031_v29 }
0x1117   :  { %1775 = vmatprep.subr.bf16.mxu0 %v4034_v30 }
0x111a   :  { %1776 = vmatpush1.bf16.msra.mxu0 %v4037_v33 }
0x111b   :  { %1777 = vmatprep.subr.bf16.mxu0 %v4040_v34 }
0x111e   :  { %1778 = vmatpush1.bf16.msra.mxu0 %v4043_v36 }
0x111f   :  { %2799 = vmatprep.subr.bf16.mxu0 %v4393_v10 }
0x1121   :  { %1796 = vmatmul.mubr.bf16.vlgmr.msra.gmra.mrb[36].mxu0 %v4090_v54 }
0x1122   :  { %2800 = vmatpush3.bf16.msra.mxu0 %v3858_v25  ;;  %2803 = vmatprep.mubr.msk.bf16.mxu0 %vm3378_vm2, %v4393_v10 }
0x1123   :  { %2801 = vmatprep.subr.bf16.mxu0 %v4393_v10 }
0x1126   :  { %2802 = vmatpush3.bf16.msra.mxu0 %v3867_v26 }
0x1127   :  { %1997 = vmatprep.subr.bf16.mxu0 %v4081_v15 }
0x11d4   :  { %v1629_v38 = vpop.f32.mrb[28].mxu0 }
0x11d5   :  { %v2867_v8 = vadd.f32 %v4117_v18, %v1629_v38  ;;  %v2769_v62 = vpop.f32.mrb[29].mxu0 }
0x11d6   :  { %v1632_v7 = vpop.f32.mrb[30].mxu0 }
0x11d7   :  { %3093 = vtanh.f32 %v2867_v8  ;;  %v2770_v2 = vpop.f32.mrb[31].mxu0  ;;  %v2513_v43 = vmul.f32 -1.442695, %v2867_v8 }
0x11d9   :  { %3095 = vpow2.f32 %v2513_v43 }
0x11e1   :  { %v3094_v37 = vpop.eup %3093 }
0x11e2   :  { %1644 = vrot.lane.b32.xlu0 %v3094_v37, %s3368_s2 }
0x11e3   :  { %v3096_v44 = vpop.eup %3095 }
0x11e4   :  { %v1638_v47 = vadd.f32 1.0, %v3096_v44 }
0x11e6   :  { %3097 = vrcp.f32 %v1638_v47 }
0x11f0   :  { %v3098_v16 = vpop.eup %3097 }
0x11f1   :  { %v1642_v35 = vmul.f32 %v3098_v16, %v3994_v55  ;;  %v4404_v55 = vld [vmem:[#allocation17_spill] sm:$0xff] }
0x11f4   :  { %v4121_v6 = vpop.f32.mrb[36].mxu0 }
0x11f5   :  { %v4123_v21 = vpop.f32.mrb[37].mxu0 }
0x11f6   :  { %v1801_v39 = vpop.f32.mrb[38].mxu0 }
0x11f7   :  { %v1802_v40 = vpop.f32.mrb[39].mxu0 }
0x11f8   :  { %v1707_v40 = vld [vmem:[#allocation2 + $0x28] sm:$0xc] }
0x11f9   :  { %v1715_v47 = vrot.slane %v1707_v40, 2 }
0x1254   :  { %v1645_v52 = vpop.permute.xlu0 %1644 }
0x1255   :  { %v1647_v53 = vmul.f32 %v3098_v16, %v1645_v52 }
0x1257   :  { %1649 = vrot.lane.b32.xlu1 %v1647_v53, %s3373_s15 }
0x12c9   :  { %v1650_v38 = vpop.permute.xlu1 %1649 }
0x12ca   :  { %v4127_v62 = vadd.f32 %v1650_v38, %v1642_v35  ;;  %v1709_v38 = vld [vmem:[#allocation2 + $0x38] sm:$0xc] }
0x12cc   :  { %3099 = vtanh.f32 %v4127_v62 }
0x12d6   :  { %v3100_v7 = vpop.eup %3099 }
0x12d7   :  { %1655 = vrot.lane.b32.xlu0 %v3100_v7, %s3368_s2 }
0x1349   :  { %v1656_v8 = vpop.permute.xlu0 %1655 }
0x134a   :  { %v1658_v2 = vmul.f32 %v3098_v16, %v1656_v8 }
0x134c   :  { %v1659_v37 = vpack.c.bf16 %v1658_v2, %v1658_v2 }
0x134e   :  { %1661 = vrot.lane.b32.xlu1 %v1659_v37, %s3373_s15  ;;  %v1717_v37 = vrot.slane %v1709_v38, 2 }
0x1350   :  { %v1800_v15 = vadd.f32 %v4123_v21, %v1717_v37 }
0x13c0   :  { %v1662_v39 = vpop.permute.xlu1 %1661 }
0x13c1   :  { %2776 = vmatmul.mubr.msk.bf16.vlgmr.msra.gmra.mrb[32].mxu1 %vm308_vm3, %v1662_v39  ;;  %v1708_v39 = vld [vmem:[#allocation2 + $0x30] sm:$0xc] }
0x13c2   :  { %1723 = vmatpush1.bf16.msra.mxu1 %v3885_v12  ;;  %1754 = vmatprep.mubr.bf16.mxu1 %v4392_v9 }
0x13c3   :  { %1724 = vmatprep.subr.bf16.mxu1 %v3889_v61 }
0x13c6   :  { %1725 = vmatpush1.bf16.msra.mxu1 %v3892_v3 }
0x13c7   :  { %1726 = vmatprep.subr.bf16.mxu1 %v3895_v13 }
0x13ca   :  { %1727 = vmatpush1.bf16.msra.mxu1 %v3898_v31 }
0x13cb   :  { %1728 = vmatprep.subr.bf16.mxu1 %v3901_v14 }
0x13ce   :  { %1729 = vmatpush1.bf16.msra.mxu1 %v3904_v17 }
0x13cf   :  { %1730 = vmatprep.subr.bf16.mxu1 %v3907_v60 }
0x13d2   :  { %1731 = vmatpush1.bf16.msra.mxu1 %v3957_v22 }
0x13d3   :  { %1732 = vmatprep.subr.bf16.mxu1 %v3960_v48 }
0x13d6   :  { %1733 = vmatpush1.bf16.msra.mxu1 %v3963_v49 }
0x13d7   :  { %1734 = vmatprep.subr.bf16.mxu1 %v3966_v50 }
0x13da   :  { %1735 = vmatpush1.bf16.msra.mxu1 %v3969_v11 }
0x13db   :  { %1736 = vmatprep.subr.bf16.mxu1 %v3972_v4 }
0x13de   :  { %1737 = vmatpush1.bf16.msra.mxu1 %v3975_v23 }
0x13df   :  { %2779 = vmatprep.subr.bf16.mxu1 %v4393_v10 }
0x13e1   :  { %1755 = vmatmul.mubr.bf16.vlgmr.msra.gmra.mrb[36].mxu1 %v4090_v54  ;;  %v1706_v54 = vld [vmem:[#allocation2 + $0x20] sm:$0xc] }
0x13e2   :  { %2780 = vmatpush3.bf16.msra.mxu1 %v4048_v41  ;;  %2795 = vmatprep.mubr.msk.bf16.mxu1 %vm3378_vm2, %v4393_v10  ;;  %v1714_v43 = vrot.slane %v1706_v54, 2 }
0x13e3   :  { %2781 = vmatprep.subr.bf16.mxu1 %v4393_v10 }
0x13e6   :  { %2782 = vmatpush3.bf16.msra.mxu1 %v4054_v42 }
0x13e7   :  { %2783 = vmatprep.subr.bf16.mxu1 %v4393_v10 }
0x13ea   :  { %2784 = vmatpush3.bf16.msra.mxu1 %v4058_v45 }
0x13eb   :  { %2785 = vmatprep.subr.bf16.mxu1 %v4393_v10 }
0x13ee   :  { %2786 = vmatpush3.bf16.msra.mxu1 %v4062_v46 }
0x13ef   :  { %2787 = vmatprep.subr.bf16.mxu1 %v4393_v10 }
0x13f2   :  { %2788 = vmatpush3.bf16.msra.mxu1 %v4066_v24 }
0x13f3   :  { %2789 = vmatprep.subr.bf16.mxu1 %v4393_v10 }
0x13f6   :  { %2790 = vmatpush3.bf16.msra.mxu1 %v4070_v27 }
0x13f7   :  { %2791 = vmatprep.subr.bf16.mxu1 %v4393_v10 }
0x13fa   :  { %2792 = vmatpush3.bf16.msra.mxu1 %v4074_v32  ;;  %v2517_v32 = vmul.f32 -1.442695, %v1800_v15 }
0x13fb   :  { %2793 = vmatprep.subr.bf16.mxu1 %v4393_v10 }
0x13fe   :  { %2794 = vmatpush3.bf16.msra.mxu1 %v4078_v0  ;;  %v1716_v0 = vrot.slane %v1708_v39, 2 }
0x13ff   :  { %1956 = vmatprep.subr.bf16.mxu1 %v4404_v55 }
0x1400   :  { %v1798_v54 = vadd.f32 %v4121_v6, %v1716_v0 }
0x14b4   :  { %v1756_v44 = vpop.f32.mrb[36].mxu1 }
0x14b5   :  { %v1757_v16 = vadd.f32 %v1756_v44, %v1714_v43  ;;  %v1758_v52 = vpop.f32.mrb[37].mxu1 }
0x14b6   :  { %v1759_v53 = vadd.f32 %v1758_v52, %v1715_v47  ;;  %v1760_v35 = vpop.f32.mrb[38].mxu1 }
0x14b7   :  { %v2515_v7 = vmul.f32 -1.442695, %v1757_v16  ;;  %v1761_v8 = vpop.f32.mrb[39].mxu1 }
0x14b8   :  { %v2516_v2 = vmul.f32 -1.442695, %v1759_v53 }
0x14b9   :  { %3101 = vpow2.f32 %v2515_v7 }
0x14ba   :  { %3103 = vpow2.f32 %v2516_v2 }
0x14bb   :  { %3105 = vpow2.f32 %v2517_v32 }
0x14bc   :  { %3107 = vtanh.f32 %v1798_v54 }
0x14c3   :  { %v3102_v27 = vpop.eup %3101 }
0x14c4   :  { %v3104_v40 = vpop.eup %3103  ;;  %v1807_v43 = vadd.f32 1.0, %v3102_v27 }
0x14c5   :  { %v1813_v44 = vadd.f32 1.0, %v3104_v40  ;;  %v3106_v47 = vpop.eup %3105 }
0x14c6   :  { %3109 = vrcp.f32 %v1807_v43  ;;  %v3108_v16 = vpop.eup %3107  ;;  %v1820_v35 = vadd.f32 1.0, %v3106_v47 }
0x14c7   :  { %3111 = vrcp.f32 %v1813_v44 }
0x14c8   :  { %3113 = vrcp.f32 %v1820_v35  ;;  %v4407_v35 = vld [vmem:[#allocation21_spill] sm:$0xff] }
0x14d0   :  { %v3110_v52 = vpop.eup %3109 }
0x14d1   :  { %v3112_v53 = vpop.eup %3111  ;;  %v1824_v38 = vmul.f32 %v3110_v52, %v3108_v16 }
0x14d2   :  { %v1823_v21 = vmul.f32 %v3112_v53, %v4087_v51  ;;  %v3114_v0 = vpop.eup %3113  ;;  %v4406_v53 = vld [vmem:[#allocation20_spill] sm:$0xff] }
0x14d4   :  { %v4172_v7 = vadd.f32 %v1824_v38, %v1823_v21  ;;  %v4408_v38 = vld [vmem:[#allocation18_spill] sm:$0xff]  ;;  %v1941_v21 = vld [vmem:[#allocation2 + $0x28] sm:$0x30] }
0x14d6   :  { %3115 = vtanh.f32 %v4172_v7 }
0x14e0   :  { %v3116_v32 = vpop.eup %3115 }
0x14e1   :  { %v1827_v27 = vmul.f32 %v3116_v32, %v3114_v0  ;;  %v1940_v0 = vld [vmem:[#allocation2 + $0x20] sm:$0x30]  ;;  %v1949_v32 = vrot.slane %v1941_v21, 4 }
0x14e3   :  { %v4175_v15 = vpack.c.bf16 %v1827_v27, %v1827_v27  ;;  %v1948_v27 = vrot.slane %v1940_v0, 4 }
0x14e5   :  { %2796 = vmatmul.mubr.bf16.vlgmr.msra.gmra.mrb[32].mxu1 %v4175_v15 }
0x14e6   :  { %1957 = vmatpush1.bf16.msra.mxu1 %v3885_v12  ;;  %1988 = vmatprep.mubr.bf16.mxu1 %v4392_v9 }
0x14e7   :  { %1958 = vmatprep.subr.bf16.mxu1 %v3889_v61 }
0x14ea   :  { %1959 = vmatpush1.bf16.msra.mxu1 %v3892_v3 }
0x14eb   :  { %1960 = vmatprep.subr.bf16.mxu1 %v3895_v13 }
0x14ee   :  { %1961 = vmatpush1.bf16.msra.mxu1 %v3898_v31 }
0x14ef   :  { %1962 = vmatprep.subr.bf16.mxu1 %v3901_v14 }
0x14f2   :  { %1963 = vmatpush1.bf16.msra.mxu1 %v3904_v17 }
0x14f3   :  { %1964 = vmatprep.subr.bf16.mxu1 %v3907_v60 }
0x14f6   :  { %1965 = vmatpush1.bf16.msra.mxu1 %v3957_v22 }
0x14f7   :  { %1966 = vmatprep.subr.bf16.mxu1 %v3960_v48 }
0x14fa   :  { %1967 = vmatpush1.bf16.msra.mxu1 %v3963_v49 }
0x14fb   :  { %1968 = vmatprep.subr.bf16.mxu1 %v3966_v50 }
0x14fe   :  { %1969 = vmatpush1.bf16.msra.mxu1 %v3969_v11 }
0x14ff   :  { %1970 = vmatprep.subr.bf16.mxu1 %v3972_v4 }
0x1502   :  { %1971 = vmatpush1.bf16.msra.mxu1 %v3975_v23 }
0x1503   :  { %2827 = vmatprep.subr.bf16.mxu1 %v4393_v10 }
0x1505   :  { %1989 = vmatmul.mubr.bf16.vlgmr.msra.gmra.mrb[40].mxu1 %v4175_v15 }
0x1506   :  { %2828 = vmatpush3.bf16.msra.mxu1 %v3858_v25  ;;  %2831 = vmatprep.mubr.msk.bf16.mxu1 %vm3378_vm2, %v4393_v10 }
0x1507   :  { %2829 = vmatprep.subr.bf16.mxu1 %v4393_v10 }
0x150a   :  { %2830 = vmatpush3.bf16.msra.mxu1 %v3867_v26 }
0x150b   :  { %2190 = vmatprep.subr.bf16.mxu1 %v4404_v55 }
0x15b8   :  { %v1863_v12 = vpop.f32.mrb[32].mxu1 }
0x15b9   :  { %v2868_v61 = vadd.f32 %v4117_v18, %v1863_v12  ;;  %v2797_v3 = vpop.f32.mrb[33].mxu1 }
0x15ba   :  { %v1866_v13 = vpop.f32.mrb[34].mxu1 }
0x15bb   :  { %3117 = vtanh.f32 %v2868_v61  ;;  %v2798_v31 = vpop.f32.mrb[35].mxu1  ;;  %v2518_v6 = vmul.f32 -1.442695, %v2868_v61 }
0x15bd   :  { %3119 = vpow2.f32 %v2518_v6 }
0x15c5   :  { %v3118_v14 = vpop.eup %3117 }
0x15c6   :  { %1878 = vrot.lane.b32.xlu0 %v3118_v14, %s3368_s2  ;;  %v1942_v14 = vld [vmem:[#allocation2 + $0x30] sm:$0x30] }
0x15c7   :  { %v3120_v26 = vpop.eup %3119 }
0x15c8   :  { %v1872_v55 = vadd.f32 1.0, %v3120_v26  ;;  %v1950_v26 = vrot.slane %v1942_v14, 4 }
0x15ca   :  { %3121 = vrcp.f32 %v1872_v55 }
0x15d4   :  { %v3122_v8 = vpop.eup %3121 }
0x15d5   :  { %v1876_v39 = vmul.f32 %v3122_v8, %v4127_v62  ;;  %v4405_v62 = vld [vmem:[#allocation19_spill] sm:$0xff] }
0x15d8   :  { %v4204_v25 = vpop.f32.mrb[40].mxu1 }
0x15d9   :  { %v4206_v17 = vpop.f32.mrb[41].mxu1  ;;  %v1991_v12 = vadd.f32 %v4204_v25, %v1948_v27 }
0x15da   :  { %v1994_v60 = vpop.f32.mrb[42].mxu1 }
0x15db   :  { %v1995_v51 = vpop.f32.mrb[43].mxu1  ;;  %v2520_v3 = vmul.f32 -1.442695, %v1991_v12 }
0x15dc   :  { %v1943_v51 = vld [vmem:[#allocation2 + $0x38] sm:$0x30] }
0x1638   :  { %v1879_v2 = vpop.permute.xlu0 %1878 }
0x1639   :  { %v1881_v37 = vmul.f32 %v3122_v8, %v1879_v2 }
0x163b   :  { %1883 = vrot.lane.b32.xlu1 %v1881_v37, %s3373_s15 }
0x16ad   :  { %v1884_v54 = vpop.permute.xlu1 %1883 }
0x16ae   :  { %v4210_v40 = vadd.f32 %v1884_v54, %v1876_v39 }
0x16b0   :  { %3123 = vtanh.f32 %v4210_v40 }
0x16ba   :  { %v3124_v43 = vpop.eup %3123 }
0x16bb   :  { %1889 = vrot.lane.b32.xlu0 %v3124_v43, %s3368_s2 }
0x172d   :  { %v1890_v44 = vpop.permute.xlu0 %1889 }
0x172e   :  { %v1892_v47 = vmul.f32 %v3122_v8, %v1890_v44  ;;  %v1951_v8 = vrot.slane %v1943_v51, 4 }
0x1730   :  { %v1893_v16 = vpack.c.bf16 %v1892_v47, %v1892_v47 }
0x1732   :  { %1895 = vrot.lane.b32.xlu1 %v1893_v16, %s3373_s15 }
0x17a4   :  { %v1896_v52 = vpop.permute.xlu1 %1895 }
0x17a5   :  { %2804 = vmatmul.mubr.msk.bf16.vlgmr.msra.gmra.mrb[40].mxu0 %vm308_vm3, %v1896_v52 }
0x17a6   :  { %1998 = vmatpush1.bf16.msra.mxu0 %v4000_v1  ;;  %2029 = vmatprep.mubr.bf16.mxu0 %v4392_v9 }
0x17a7   :  { %1999 = vmatprep.subr.bf16.mxu0 %v4004_v28 }
0x17aa   :  { %2000 = vmatpush1.bf16.msra.mxu0 %v4007_v63 }
0x17ab   :  { %2001 = vmatprep.subr.bf16.mxu0 %v4010_v5 }
0x17ae   :  { %2002 = vmatpush1.bf16.msra.mxu0 %v4013_v59 }
0x17af   :  { %2003 = vmatprep.subr.bf16.mxu0 %v4016_v57 }
0x17b2   :  { %2004 = vmatpush1.bf16.msra.mxu0 %v4019_v56 }
0x17b3   :  { %2005 = vmatprep.subr.bf16.mxu0 %v4022_v58 }
0x17b6   :  { %2006 = vmatpush1.bf16.msra.mxu0 %v4025_v19 }
0x17b7   :  { %2007 = vmatprep.subr.bf16.mxu0 %v4028_v20 }
0x17ba   :  { %2008 = vmatpush1.bf16.msra.mxu0 %v4031_v29 }
0x17bb   :  { %2009 = vmatprep.subr.bf16.mxu0 %v4034_v30 }
0x17be   :  { %2010 = vmatpush1.bf16.msra.mxu0 %v4037_v33 }
0x17bf   :  { %2011 = vmatprep.subr.bf16.mxu0 %v4040_v34 }
0x17c2   :  { %2012 = vmatpush1.bf16.msra.mxu0 %v4043_v36 }
0x17c3   :  { %2807 = vmatprep.subr.bf16.mxu0 %v4393_v10 }
0x17c5   :  { %2030 = vmatmul.mubr.bf16.vlgmr.msra.gmra.mrb[44].mxu0 %v4175_v15  ;;  %v1993_v15 = vadd.f32 %v4206_v17, %v1949_v32 }
0x17c6   :  { %2808 = vmatpush3.bf16.msra.mxu0 %v4048_v41  ;;  %2823 = vmatprep.mubr.msk.bf16.mxu0 %vm3378_vm2, %v4393_v10 }
0x17c7   :  { %2809 = vmatprep.subr.bf16.mxu0 %v4393_v10  ;;  %v2521_v61 = vmul.f32 -1.442695, %v1993_v15 }
0x17c9   :  { %3125 = vpow2.f32 %v2521_v61 }
0x17ca   :  { %2810 = vmatpush3.bf16.msra.mxu0 %v4054_v42  ;;  %3127 = vpow2.f32 %v2520_v3 }
0x17cb   :  { %2811 = vmatprep.subr.bf16.mxu0 %v4393_v10 }
0x17ce   :  { %2812 = vmatpush3.bf16.msra.mxu0 %v4058_v45 }
0x17cf   :  { %2813 = vmatprep.subr.bf16.mxu0 %v4393_v10 }
0x17d2   :  { %2814 = vmatpush3.bf16.msra.mxu0 %v4062_v46 }
0x17d3   :  { %2815 = vmatprep.subr.bf16.mxu0 %v4393_v10  ;;  %v3126_v13 = vpop.eup %3125 }
0x17d4   :  { %v3128_v31 = vpop.eup %3127  ;;  %v2047_v60 = vadd.f32 1.0, %v3126_v13 }
0x17d5   :  { %v2041_v6 = vadd.f32 1.0, %v3128_v31 }
0x17d6   :  { %2816 = vmatpush3.bf16.msra.mxu0 %v4066_v24  ;;  %3129 = vrcp.f32 %v2047_v60 }
0x17d7   :  { %2817 = vmatprep.subr.bf16.mxu0 %v4393_v10  ;;  %3131 = vrcp.f32 %v2041_v6 }
0x17da   :  { %2818 = vmatpush3.bf16.msra.mxu0 %v4405_v62 }
0x17db   :  { %2819 = vmatprep.subr.bf16.mxu0 %v4393_v10 }
0x17de   :  { %2820 = vmatpush3.bf16.msra.mxu0 %v4406_v53 }
0x17df   :  { %2821 = vmatprep.subr.bf16.mxu0 %v4393_v10 }
0x17e0   :  { %v3130_v43 = vpop.eup %3129 }
0x17e1   :  { %v3132_v44 = vpop.eup %3131  ;;  %v2057_v16 = vmul.f32 %v3130_v43, %v4172_v7 }
0x17e2   :  { %2822 = vmatpush3.bf16.msra.mxu0 %v4407_v35 }
0x17e3   :  { %2231 = vmatprep.subr.bf16.mxu0 %v4408_v38 }
0x1898   :  { %v2031_v55 = vpop.f32.mrb[44].mxu0 }
0x1899   :  { %v2032_v2 = vadd.f32 %v2031_v55, %v1950_v26  ;;  %v2033_v37 = vpop.f32.mrb[45].mxu0  ;;  %v3216_v26 = vld [vmem:[#allocation6] ss:$16 sps:$4 sm:$0xff]  }
0x189a   :  { %v2034_v17 = vadd.f32 %v2033_v37, %v1951_v8  ;;  %v2035_v39 = vpop.f32.mrb[46].mxu0  ;;  %v3218_v55 = vld [vmem:[#allocation6 + $0x20] ss:$16 sps:$4 sm:$0xff]   ;;  %v3219_v8 = vld [vmem:[#allocation6 + $0x44] ss:$16 sps:$4 sm:$0xff]  }
0x189b   :  { %3133 = vtanh.f32 %v2032_v2  ;;  %v2036_v25 = vpop.f32.mrb[47].mxu0  ;;  %v3220_v2 = vld [vmem:[#allocation6 + $0x40] ss:$16 sps:$4 sm:$0xff]   ;;  %v3221_v37 = vld [vmem:[#allocation6 + $0x64] ss:$16 sps:$4 sm:$0xff]  }
0x189c   :  { %v2522_v54 = vmul.f32 -1.442695, %v2034_v17  ;;  %v3222_v17 = vld [vmem:[#allocation6 + $0x60] ss:$16 sps:$4 sm:$0xff]   ;;  %v3223_v39 = vld [vmem:[#allocation6 + $0x84] ss:$16 sps:$4 sm:$0xff]  }
0x189e   :  { %3135 = vpow2.f32 %v2522_v54 }
0x18a5   :  { %v3134_v47 = vpop.eup %3133 }
0x18a6   :  { %v2058_v52 = vmul.f32 %v3134_v47, %v3132_v44 }
0x18a8   :  { %v3136_v38 = vpop.eup %3135  ;;  %v4255_v21 = vadd.f32 %v2058_v52, %v2057_v16 }
0x18a9   :  { %v2054_v0 = vadd.f32 1.0, %v3136_v38 }
0x18aa   :  { %3137 = vtanh.f32 %v4255_v21 }
0x18ab   :  { %3139 = vrcp.f32 %v2054_v0 }
0x18b4   :  { %v3138_v32 = vpop.eup %3137 }
0x18b5   :  { %v3140_v27 = vpop.eup %3139 }
0x18b6   :  { %v2061_v15 = vmul.f32 %v3140_v27, %v3138_v32 }
0x18b8   :  { %v4258_v12 = vpack.c.bf16 %v2061_v15, %v2061_v15 }
0x18ba   :  { %2824 = vmatmul.mubr.bf16.vlgmr.msra.gmra.mrb[40].mxu0 %v4258_v12 }
0x18bb   :  { %2232 = vmatpush1.bf16.msra.mxu0 %v4000_v1  ;;  %2263 = vmatprep.mubr.bf16.mxu0 %v4392_v9 }
0x18bc   :  { %2233 = vmatprep.subr.bf16.mxu0 %v4004_v28 }
0x18bf   :  { %2234 = vmatpush1.bf16.msra.mxu0 %v4007_v63 }
0x18c0   :  { %2235 = vmatprep.subr.bf16.mxu0 %v4010_v5 }
0x18c3   :  { %2236 = vmatpush1.bf16.msra.mxu0 %v4013_v59 }
0x18c4   :  { %2237 = vmatprep.subr.bf16.mxu0 %v4016_v57 }
0x18c7   :  { %2238 = vmatpush1.bf16.msra.mxu0 %v4019_v56 }
0x18c8   :  { %2239 = vmatprep.subr.bf16.mxu0 %v4022_v58 }
0x18cb   :  { %2240 = vmatpush1.bf16.msra.mxu0 %v4025_v19 }
0x18cc   :  { %2241 = vmatprep.subr.bf16.mxu0 %v4028_v20 }
0x18cf   :  { %2242 = vmatpush1.bf16.msra.mxu0 %v4031_v29 }
0x18d0   :  { %2243 = vmatprep.subr.bf16.mxu0 %v4034_v30 }
0x18d3   :  { %2244 = vmatpush1.bf16.msra.mxu0 %v4037_v33 }
0x18d4   :  { %2245 = vmatprep.subr.bf16.mxu0 %v4040_v34 }
0x18d7   :  { %2246 = vmatpush1.bf16.msra.mxu0 %v4043_v36 }
0x18d8   :  { %2855 = vmatprep.subr.bf16.mxu0 %v4393_v10 }
0x18da   :  { %2264 = vmatmul.mubr.bf16.vlgmr.msra.gmra.mrb[48].mxu0 %v4258_v12 }
0x18db   :  { %2859 = vmatprep.mubr.msk.bf16.mxu0 %vm3378_vm2, %v4393_v10 }
0x198d   :  { %v2097_v1 = vpop.f32.mrb[40].mxu0 }
0x198e   :  { %v2869_v28 = vadd.f32 %v4117_v18, %v2097_v1  ;;  %v2825_v63 = vpop.f32.mrb[41].mxu0 }
0x198f   :  { %v2100_v5 = vpop.f32.mrb[42].mxu0 }
0x1990   :  { %3141 = vtanh.f32 %v2869_v28  ;;  %v2826_v59 = vpop.f32.mrb[43].mxu0  ;;  %v2523_v29 = vmul.f32 -1.442695, %v2869_v28 }
0x1992   :  { %3143 = vpow2.f32 %v2523_v29 }
0x199a   :  { %v3142_v57 = vpop.eup %3141 }
0x199b   :  { %2112 = vrot.lane.b32.xlu0 %v3142_v57, %s3368_s2 }
0x199c   :  { %v3144_v30 = vpop.eup %3143 }
0x199d   :  { %v2106_v33 = vadd.f32 1.0, %v3144_v30 }
0x199f   :  { %3145 = vrcp.f32 %v2106_v33 }
0x19a9   :  { %v3146_v34 = vpop.eup %3145 }
0x19aa   :  { %v2110_v61 = vmul.f32 %v3146_v34, %v4210_v40  ;;  %v3217_v40 = vld [vmem:[#allocation6 + $0x24] ss:$16 sps:$4 sm:$0xff]  }
0x19ad   :  { %v4283_v56 = vpop.f32.mrb[48].mxu0 }
0x19ae   :  { %v4285_v58 = vpop.f32.mrb[49].mxu0 }
0x19af   :  { %v2269_v19 = vpop.f32.mrb[50].mxu0 }
0x19b0   :  { %v2270_v20 = vpop.f32.mrb[51].mxu0 }
0x1a0d   :  { %v2113_v36 = vpop.permute.xlu0 %2112 }
0x1a0e   :  { %v2115_v7 = vmul.f32 %v3146_v34, %v2113_v36 }
0x1a10   :  { %2117 = vrot.lane.b32.xlu1 %v2115_v7, %s3373_s15 }
0x1a82   :  { %v2118_v3 = vpop.permute.xlu1 %2117 }
0x1a83   :  { %v4289_v13 = vadd.f32 %v2118_v3, %v2110_v61 }
0x1a85   :  { %3147 = vtanh.f32 %v4289_v13 }
0x1a8f   :  { %v3148_v31 = vpop.eup %3147 }
0x1a90   :  { %2123 = vrot.lane.b32.xlu0 %v3148_v31, %s3368_s2 }
0x1b02   :  { %v2124_v14 = vpop.permute.xlu0 %2123 }
0x1b03   :  { %v2126_v60 = vmul.f32 %v3146_v34, %v2124_v14  ;;  %v2979_v14 = vld [vmem:[%s4361_s7] sm:$0xff]  }
0x1b04   :  { %2856 = vmatpush3.bf16.msra.mxu0 %v2979_v14 }
0x1b05   :  { %v2127_v51 = vpack.c.bf16 %v2126_v60, %v2126_v60  ;;  %v2980_v60 = vld [vmem:[%s4361_s7 + $0x8] sm:$0xff]   ;;  %2857 = vmatprep.subr.bf16.mxu0 %v4393_v10  ;;  %s2432_s7 = sshll.u32 %s3379_s21, 4  ;;  %s2433_s7 = int_to_ptr.vmem [resolvable:$true] %s2432_s7 }
0x1b06   :  { %p3339_p13 = scmp.lt.s32.totalorder %s2433_s7, %s2433_s7 }
0x1b07   :  { %2129 = vrot.lane.b32.xlu1 %v2127_v51, %s3373_s15 }
0x1b08   :  { %2858 = vmatpush3.bf16.msra.mxu0 %v2980_v60 }
0x1b79   :  { %v2130_v6 = vpop.permute.xlu1 %2129 }
0x1b7a   :  { %2832 = vmatmul.mubr.msk.bf16.vlgmr.msra.gmra.mrb[44].mxu1 %vm308_vm3, %v2130_v6 }
0x1b7b   :  { %2191 = vmatpush1.bf16.msra.mxu1 %v3216_v26  ;;  %2222 = vmatprep.mubr.bf16.mxu1 %v4392_v9  ;;  %v2174_v9 = vld [vmem:[#allocation2 + $0x20] sm:$0xc0] }
0x1b7c   :  { %2192 = vmatprep.subr.bf16.mxu1 %v3217_v40 }
0x1b7f   :  { %2193 = vmatpush1.bf16.msra.mxu1 %v3218_v55  ;;  %v2366_v55 = vld [vmem:[%s4362_s8] sm:$0x3] }
0x1b80   :  { %2194 = vmatprep.subr.bf16.mxu1 %v3219_v8 }
0x1b83   :  { %2195 = vmatpush1.bf16.msra.mxu1 %v3220_v2 }
0x1b84   :  { %2196 = vmatprep.subr.bf16.mxu1 %v3221_v37 }
0x1b87   :  { %2197 = vmatpush1.bf16.msra.mxu1 %v3222_v17 }
0x1b88   :  { %2198 = vmatprep.subr.bf16.mxu1 %v3223_v39 }
0x1b8b   :  { %2199 = vmatpush1.bf16.msra.mxu1 %v3957_v22  ;;  %v2175_v22 = vld [vmem:[#allocation2 + $0x28] sm:$0xc0] }
0x1b8c   :  { %2200 = vmatprep.subr.bf16.mxu1 %v3960_v48  ;;  %v2182_v48 = vrot.slane %v2174_v9, 6 }
0x1b8f   :  { %2201 = vmatpush1.bf16.msra.mxu1 %v3963_v49 }
0x1b90   :  { %2202 = vmatprep.subr.bf16.mxu1 %v3966_v50  ;;  %v2183_v50 = vrot.slane %v2175_v22, 6 }
0x1b93   :  { %2203 = vmatpush1.bf16.msra.mxu1 %v3969_v11 }
0x1b94   :  { %2204 = vmatprep.subr.bf16.mxu1 %v3972_v4 }
0x1b97   :  { %2205 = vmatpush1.bf16.msra.mxu1 %v3975_v23 }
0x1b98   :  { %2835 = vmatprep.subr.bf16.mxu1 %v4393_v10 }
0x1b9a   :  { %2223 = vmatmul.mubr.bf16.vlgmr.msra.gmra.mrb[48].mxu1 %v4258_v12 }
0x1b9b   :  { %2836 = vmatpush3.bf16.msra.mxu1 %v4048_v41  ;;  %2851 = vmatprep.mubr.msk.bf16.mxu1 %vm3378_vm2, %v4393_v10 }
0x1b9c   :  { %2837 = vmatprep.subr.bf16.mxu1 %v4393_v10 }
0x1b9f   :  { %2838 = vmatpush3.bf16.msra.mxu1 %v4054_v42  ;;  %v2177_v42 = vld [vmem:[#allocation2 + $0x38] sm:$0xc0] }
0x1ba0   :  { %2839 = vmatprep.subr.bf16.mxu1 %v4393_v10 }
0x1ba3   :  { %2840 = vmatpush3.bf16.msra.mxu1 %v4058_v45 }
0x1ba4   :  { %2841 = vmatprep.subr.bf16.mxu1 %v4393_v10 }
0x1ba7   :  { %2842 = vmatpush3.bf16.msra.mxu1 %v4062_v46 }
0x1ba8   :  { %2843 = vmatprep.subr.bf16.mxu1 %v4393_v10 }
0x1bab   :  { %2844 = vmatpush3.bf16.msra.mxu1 %v4066_v24 }
0x1bac   :  { %2845 = vmatprep.subr.bf16.mxu1 %v4393_v10 }
0x1baf   :  { %2846 = vmatpush3.bf16.msra.mxu1 %v4405_v62  ;;  %v2185_v62 = vrot.slane %v2177_v42, 6 }
0x1bb0   :  { %2847 = vmatprep.subr.bf16.mxu1 %v4393_v10 }
0x1bb1   :  { %v2268_v25 = vadd.f32 %v4285_v58, %v2185_v62 }
0x1bb3   :  { %2848 = vmatpush3.bf16.msra.mxu1 %v4406_v53  ;;  %v2176_v53 = vld [vmem:[#allocation2 + $0x30] sm:$0xc0]  ;;  %v2527_v54 = vmul.f32 -1.442695, %v2268_v25 }
0x1bb4   :  { %2849 = vmatprep.subr.bf16.mxu1 %v4393_v10 }
0x1bb7   :  { %2850 = vmatpush3.bf16.msra.mxu1 %v4407_v35  ;;  %v2184_v35 = vrot.slane %v2176_v53, 6 }
0x1bb9   :  { %v2266_v43 = vadd.f32 %v4283_v56, %v2184_v35 }
0x1c6d   :  { %v2224_v49 = vpop.f32.mrb[48].mxu1 }
0x1c6e   :  { %v2225_v11 = vadd.f32 %v2224_v49, %v2182_v48  ;;  %v2226_v4 = vpop.f32.mrb[49].mxu1 }
0x1c6f   :  { %v2227_v23 = vadd.f32 %v2226_v4, %v2183_v50  ;;  %v2228_v41 = vpop.f32.mrb[50].mxu1 }
0x1c70   :  { %v2525_v45 = vmul.f32 -1.442695, %v2225_v11  ;;  %v2229_v46 = vpop.f32.mrb[51].mxu1 }
0x1c71   :  { %v2526_v24 = vmul.f32 -1.442695, %v2227_v23 }
0x1c72   :  { %3149 = vpow2.f32 %v2525_v45 }
0x1c73   :  { %3151 = vpow2.f32 %v2526_v24 }
0x1c74   :  { %3153 = vpow2.f32 %v2527_v54 }
0x1c75   :  { %3155 = vtanh.f32 %v2266_v43 }
0x1c7c   :  { %v3150_v44 = vpop.eup %3149 }
0x1c7d   :  { %v3152_v47 = vpop.eup %3151  ;;  %v2275_v16 = vadd.f32 1.0, %v3150_v44 }
0x1c7e   :  { %v2281_v52 = vadd.f32 1.0, %v3152_v47  ;;  %v3154_v38 = vpop.eup %3153 }
0x1c7f   :  { %3157 = vrcp.f32 %v2275_v16  ;;  %v3156_v0 = vpop.eup %3155  ;;  %v2288_v15 = vadd.f32 1.0, %v3154_v38 }
0x1c80   :  { %3159 = vrcp.f32 %v2281_v52 }
0x1c81   :  { %3161 = vrcp.f32 %v2288_v15 }
0x1c89   :  { %v3158_v32 = vpop.eup %3157 }
0x1c8a   :  { %v3160_v27 = vpop.eup %3159  ;;  %v2292_v12 = vmul.f32 %v3158_v32, %v3156_v0 }
0x1c8b   :  { %v2291_v1 = vmul.f32 %v3160_v27, %v4255_v21  ;;  %v3162_v63 = vpop.eup %3161 }
0x1c8d   :  { %v2293_v28 = vadd.f32 %v2292_v12, %v2291_v1 }
0x1c8f   :  { %3163 = vtanh.f32 %v2293_v28 }
0x1c99   :  { %v3164_v5 = vpop.eup %3163 }
0x1c9a   :  { %v2295_v59 = vmul.f32 %v3164_v5, %v3162_v63 }
0x1c9c   :  { %v2296_v57 = vpack.c.bf16 %v2295_v59, %v2295_v59 }
0x1c9e   :  { %2852 = vmatmul.mubr.bf16.vlgmr.msra.gmra.mrb[44].mxu1 %v2296_v57 }
0x1d71   :  { %v2331_v56 = vpop.f32.mrb[44].mxu1 }
0x1d72   :  { %v2870_v58 = vadd.f32 %v4117_v18, %v2331_v56  ;;  %v2853_v19 = vpop.f32.mrb[45].mxu1 }
0x1d73   :  { %v2334_v20 = vpop.f32.mrb[46].mxu1 }
0x1d74   :  { %3165 = vtanh.f32 %v2870_v58  ;;  %v2854_v29 = vpop.f32.mrb[47].mxu1  ;;  %v2528_v33 = vmul.f32 -1.442695, %v2870_v58 }
0x1d76   :  { %3167 = vpow2.f32 %v2528_v33 }
0x1d7e   :  { %v3166_v30 = vpop.eup %3165 }
0x1d7f   :  { %2346 = vrot.lane.b32.xlu0 %v3166_v30, %s3368_s2 }
0x1d80   :  { %v3168_v21 = vpop.eup %3167 }
0x1d81   :  { %v2340_v34 = vadd.f32 1.0, %v3168_v21 }
0x1d83   :  { %3169 = vrcp.f32 %v2340_v34 }
0x1d8d   :  { %v3170_v36 = vpop.eup %3169 }
0x1d8e   :  { %v2344_v3 = vmul.f32 %v3170_v36, %v4289_v13 }
0x1df1   :  { %v2347_v7 = vpop.permute.xlu0 %2346 }
0x1df2   :  { %v2349_v61 = vmul.f32 %v3170_v36, %v2347_v7 }
0x1df4   :  { %2351 = vrot.lane.b32.xlu1 %v2349_v61, %s3373_s15 }
0x1e66   :  { %v2352_v18 = vpop.permute.xlu1 %2351 }
0x1e67   :  { %v2354_v31 = vadd.f32 %v2352_v18, %v2344_v3 }
0x1e69   :  { %3171 = vtanh.f32 %v2354_v31 }
0x1e73   :  { %v3172_v51 = vpop.eup %3171 }
0x1e74   :  { %2357 = vrot.lane.b32.xlu0 %v3172_v51, %s3368_s2  ;;  %s3334_s2 = scalar_lea.vmem %s2433_s7, 32 }
0x1e75   :  { %p3335_p12 = scmp.ne.s32.totalorder %s2433_s7, %s3334_s2  ;;  %p3340_p0 = scmp.lt.s32.totalorder %s3334_s2, %s3334_s2 }
0x1e77   :  { %p3341_p1 = por %p3340_p0, %p3339_p13 }
0x1e79   :  { %p3342_p2 = pnand %p3341_p1, %p3335_p12 }
0x1ee6   :  { %v2358_v6 = vpop.permute.xlu0 %2357 }
0x1ee7   :  { %v2360_v13 = vmul.f32 %v3170_v36, %v2358_v6 }
0x1ee9   :  { %v2361_v26 = vpack.c.bf16 %v2360_v13, %v2360_v13 }
0x1eeb   :  { %2368 = vrot.lane.b32.xlu1 %v2361_v26, %s3373_s15 }
0x1f5d   :  { %v2369_v40 = vpop.permute.xlu1 %2368 }
0x1f5e   :  { %2860 = vmatmul.mubr.msk.bf16.vlgmr.msra.gmra.mrb[52].mxu0 %vm308_vm3, %v2369_v40 }
0x2031   :  { %v2419_v8 = vpop.f32.mrb[52].mxu0 }
0x2032   :  { %v2420_v10 = vadd.f32 %v2419_v8, %v2366_v55  ;;  %v2861_v2 = vpop.f32.mrb[53].mxu0 }
0x2033   :  { %v2422_v37 = vpop.f32.mrb[54].mxu0 }
0x2034   :  { %2425 = vst [vmem:[#allocation12] sm:$0x3] %v2420_v10  ;;  %v2862_v17 = vpop.f32.mrb[55].mxu0 }
0x2035   :  { %3345 = shalt.err (!%p3342_p2)
}
0x2036   :  { %s3346_s8 = scalar_lea.hbm %s4363_s9, 32 }
0x2037   :  { %p3347_p3 = scmp.ne.s32.totalorder %s4363_s9, %s3346_s8  ;;  %p3350_p4 = scmp.lt.u32.totalorder %s3346_s8, %s4363_s9 }
0x2039   :  { %p3352_p5 = pnand %p3350_p4, %p3347_p3 }
0x203b   :  { %3355 = shalt.err (!%p3352_p5)
}
0x203c   :  { %2435 = dma.vmem_to_hbm [thread:$0]  %s2433_s7, 32, %s4363_s9, [#allocation5]  }
0x203d   :  { %3362 = dma.done.wait [#allocation5], 32  }
0x203e   :  { %3363 = vsyncadd [#allocation5], 4294967264 }
0x203f   :  { %2439 = vsyncpa [#allocation4], 1 }
0x2040   :  { %2440 = vsyncpa [#allocation7], 1 }
0x2041   :  { %2441 = vsyncpa [#allocation10], 1 }
0x2042   :  { %2442 = vsyncpa [#allocation5], 1 }

</bundles_post_ra>
